<compile_context>
chip_gen: v5e
topology: v5e:2x2
jax: 0.10.0
libtpu: 0.0.40
codegen_flags: <defaults>
</compile_context>

<pallas_src>
import jax
import jax.numpy as jnp
from jax.experimental import pallas as pl
from jax.experimental.pallas import tpu as pltpu

# ---- model hyperparameters (from the PyTorch module) ----
N_EMBD = 64
BLOCK_SIZE = 32
NUM_HEADS = 4
NUM_LAYERS = 3
HEAD_SIZE = N_EMBD // NUM_HEADS
VOCAB_SIZE = 65          # chars = sorted(set(text)); small deterministic vocab
VOCAB_PAD = 128          # lane-dense padded vocab for the lm head / output
LN_EPS = 1e-5


def _layernorm(h, g, b):
    # Fused-statistics layernorm: one pass computes sum(x) and sum(x*x) (the two
    # reductions are independent), var = E[x^2] - E[x]^2.
    inv_d = 1.0 / N_EMBD
    mu = jnp.sum(h, axis=-1, keepdims=True) * inv_d
    ms = jnp.sum(h * h, axis=-1, keepdims=True) * inv_d
    var = ms - mu * mu
    return (h - mu) * jax.lax.rsqrt(var + LN_EPS) * g + b


def bigram_lm_kernel(
    x_ref,                       # (Bb, Tp, D)    token+pos embeddings (f32)
    bias_ref,                    # (Tp, H*Tp)     additive causal bias, tiled per head
    hmask_ref,                   # (H*Tp, D)      head-column mask for stacked k/v rows
    gones_ref,                   # (H*Tp, H*Tp)   block-diag ones (per-head group sums)
    ln1g_ref, ln1b_ref,          # (L, D)         f32
    wqkv_ref,                    # (L, D, 3D)     bf16, q-columns pre-scaled by D**-0.5
    ln2g_ref, ln2b_ref,          # (L, D)         f32
    w1_ref, b1_ref,              # (L, D, 4D) bf16, (L, 4D) f32
    w2_ref, b2_ref,              # (L, 4D, D) bf16, (L, D) f32
    lnfg_ref, lnfb_ref,          # (1, D)         f32
    wlm_ref, blm_ref,            # (D, Vp) bf16, (1, Vp) f32
    out_ref,                     # (Bb, Tp, Vp)   bf16
):
    Bb, Tp, D = x_ref.shape
    HTp = NUM_HEADS * Tp
    rows = Bb * Tp
    x = x_ref[...].astype(jnp.float32).reshape(rows, D)    # fused (rows, D) slab

    # Hoisted broadcasts: the layer loop is Python-unrolled and JAX does not CSE
    # broadcast_in_dim, so build these once per invocation.
    bias_b = jnp.broadcast_to(bias_ref[...], (Bb, Tp, HTp))     # (Bb, Tp, H*Tp)
    hmask_b = jnp.broadcast_to(hmask_ref[...], (Bb, HTp, D))    # (Bb, H*Tp, D)
    gones = gones_ref[...]                                      # (H*Tp, H*Tp)

    for l in range(NUM_LAYERS):
        # ---- multi-head causal self-attention (no output projection in ref code) ----
        h = _layernorm(x, ln1g_ref[l], ln1b_ref[l])
        qkv = jnp.dot(h.astype(jnp.bfloat16), wqkv_ref[l],
                      preferred_element_type=jnp.float32)        # (rows, 3D)

        q = qkv[:, :D].reshape(Bb, Tp, D).astype(jnp.bfloat16)   # pre-scaled by D**-0.5
        k = qkv[:, D:2 * D].reshape(Bb, Tp, D)
        v = qkv[:, 2 * D:].reshape(Bb, Tp, D)

        # Stack H masked copies of k/v along the key axis: stacked row (h, kt)
        # keeps only head h's HEAD_SIZE columns, so a single batched einsum
        # computes every head's scores / outputs at once.
        k_s = (jnp.concatenate([k] * NUM_HEADS, axis=1) * hmask_b).astype(jnp.bfloat16)
        v_s = (jnp.concatenate([v] * NUM_HEADS, axis=1) * hmask_b).astype(jnp.bfloat16)

        wei = jnp.einsum("bqd,bkd->bqk", q, k_s,
                         preferred_element_type=jnp.float32)      # (Bb, Tp, H*Tp)
        # No row-max subtraction: q is pre-scaled so scores are small and the
        # finite -1e30 mask underflows exp() to exactly 0.
        p = jnp.exp(wei + bias_b).reshape(rows, HTp)              # f32 probabilities*Z

        # Per-(query, head) softmax denominator via a block-diag ones matmul (MXU);
        # the result is already broadcast across each head's Tp lanes.
        denom = jnp.dot(p, gones, preferred_element_type=jnp.float32)
        pn = (p * pl.reciprocal(denom, approx=True)).astype(jnp.bfloat16)

        sa = jnp.einsum("bqk,bkd->bqd", pn.reshape(Bb, Tp, HTp), v_s,
                        preferred_element_type=jnp.float32)       # (Bb, Tp, D), head-major cols
        x = x + sa.reshape(rows, D)

        # ---- feed-forward (dropout = eval-mode identity) ----
        h2 = _layernorm(x, ln2g_ref[l], ln2b_ref[l])
        ff = jnp.dot(h2.astype(jnp.bfloat16), w1_ref[l],
                     preferred_element_type=jnp.float32) + b1_ref[l]
        ff = jnp.maximum(ff, 0.0)
        ff = jnp.dot(ff.astype(jnp.bfloat16), w2_ref[l],
                     preferred_element_type=jnp.float32) + b2_ref[l]
        x = x + ff

    # ---- final layernorm + lm head (padded to 128 lanes, bf16 writeback) ----
    x = _layernorm(x, lnfg_ref[0], lnfb_ref[0])
    logits = jnp.dot(x.astype(jnp.bfloat16), wlm_ref[...],
                     preferred_element_type=jnp.float32) + blm_ref[0]
    out_ref[...] = logits.reshape(out_ref.shape).astype(out_ref.dtype)


def make_params(key):
    ks = jax.random.split(key, 10)
    init = lambda k, shape: (0.02 * jax.random.normal(k, shape)).astype(jnp.float32)
    L, D, V = NUM_LAYERS, N_EMBD, VOCAB_SIZE
    return dict(
        tok_emb=init(ks[0], (V, D)),
        pos_emb=init(ks[1], (BLOCK_SIZE, D)),
        ln1_g=jnp.ones((L, D), jnp.float32),
        ln1_b=jnp.zeros((L, D), jnp.float32),
        # PyTorch nn.Linear stores (out,in); we store the transposed (in,out) form.
        wq=init(ks[2], (L, D, D)),
        wk=init(ks[3], (L, D, D)),
        wv=init(ks[4], (L, D, D)),
        ln2_g=jnp.ones((L, D), jnp.float32),
        ln2_b=jnp.zeros((L, D), jnp.float32),
        w1=init(ks[5], (L, D, 4 * D)),
        b1=jnp.zeros((L, 4 * D), jnp.float32),
        w2=init(ks[6], (L, 4 * D, D)),
        b2=jnp.zeros((L, D), jnp.float32),
        lnf_g=jnp.ones((1, D), jnp.float32),
        lnf_b=jnp.zeros((1, D), jnp.float32),
        wlm=init(ks[7], (D, V)),
        blm=jnp.zeros((1, V), jnp.float32),
    )


def _pack_params(params):
    """Fuse / pad / bf16-cast weights into the layout the kernel wants."""
    D, V = N_EMBD, VOCAB_SIZE
    scale = N_EMBD ** -0.5                       # = 0.125 exactly (power of two)
    wqkv = jnp.concatenate(
        [params["wq"] * scale, params["wk"], params["wv"]], axis=-1
    ).astype(jnp.bfloat16)                       # (L, D, 3D), q pre-scaled
    wlm = jnp.zeros((D, VOCAB_PAD), jnp.float32).at[:, :V].set(params["wlm"])
    blm = jnp.zeros((1, VOCAB_PAD), jnp.float32).at[:, :V].set(params["blm"])
    return [
        params["ln1_g"], params["ln1_b"],
        wqkv,
        params["ln2_g"], params["ln2_b"],
        params["w1"].astype(jnp.bfloat16), params["b1"],
        params["w2"].astype(jnp.bfloat16), params["b2"],
        params["lnf_g"], params["lnf_b"],
        wlm.astype(jnp.bfloat16), blm,
    ]


def _full_spec(arr):
    nd = arr.ndim
    return pl.BlockSpec(arr.shape, lambda g, _nd=nd: (0,) * _nd)


def _num_grid_steps(B, Tp):
    # Split the batch across grid steps only when every step still presents a
    # full MXU M tile (>= 256 fused rows).  At tiny batches (e.g. B=2, T=8) one
    # step wins on every chip: v5e/v6e have a single TensorCore (extra steps are
    # a serial loop + ~0.35 us each) and on v7x a <256-row tile starves the
    # second core.  For big batches this also caps per-step f32 x / bf16 logits
    # blocks well inside VMEM on all generations (incl. v7x's 64 MiB).
    target_rows = 256
    g = 1
    for cand in range(2, B + 1):
        if B % cand == 0 and (B // cand) * Tp >= target_rows:
            g = cand
    return g


@jax.jit
def bigram_lm_forward(idx, params):
    """Forward pass. idx: (B, T) int32 tokens. Returns logits (B, T, V) f32."""
    B, T = idx.shape
    assert T <= BLOCK_SIZE
    Tp = ((T + 7) // 8) * 8                      # sublane-aligned sequence length
    HTp = NUM_HEADS * Tp

    # glue: embedding gathers (tiny; no Pallas gather needed)
    tok = jnp.take(params["tok_emb"], idx, axis=0)            # (B, T, D)
    pos = params["pos_emb"][:T]                               # (T, D)
    x = (tok + pos[None]).astype(jnp.float32)                 # (B, T, D)
    if Tp != T:
        x = jnp.pad(x, ((0, 0), (0, Tp - T), (0, 0)))         # padded rows discarded later

    # additive causal bias (0 on/below diagonal, -1e30 above), tiled H times along
    # the lane axis to match the head-stacked score layout (Tp, H*Tp).
    r = jnp.arange(Tp)
    causal = jnp.where(r[:, None] >= r[None, :], 0.0, -1e30).astype(jnp.float32)
    bias_tiled = jnp.tile(causal, (1, NUM_HEADS))             # (Tp, H*Tp)

    # head-column mask for the stacked k/v rows: row h*Tp+kt keeps only head h's cols
    row_heads = jnp.repeat(jnp.arange(NUM_HEADS), Tp)         # (H*Tp,)
    col_heads = jnp.repeat(jnp.arange(NUM_HEADS), HEAD_SIZE)  # (D,)
    hmask = (row_heads[:, None] == col_heads[None, :]).astype(jnp.float32)  # (H*Tp, D)

    # block-diagonal ones: per-(query, head) softmax group sums via one MXU matmul
    gones = jnp.kron(jnp.eye(NUM_HEADS, dtype=jnp.float32),
                     jnp.ones((Tp, Tp), jnp.float32))         # (H*Tp, H*Tp)

    G = _num_grid_steps(B, Tp)
    Bb = B // G

    weights = _pack_params(params)
    in_specs = [
        pl.BlockSpec((Bb, Tp, N_EMBD), lambda g: (g, 0, 0)),
        pl.BlockSpec(bias_tiled.shape, lambda g: (0, 0)),
        pl.BlockSpec(hmask.shape, lambda g: (0, 0)),
        pl.BlockSpec(gones.shape, lambda g: (0, 0)),
    ] + [_full_spec(w) for w in weights]          # constant index maps -> fetched once

    out = pl.pallas_call(
        bigram_lm_kernel,
        out_shape=jax.ShapeDtypeStruct((B, Tp, VOCAB_PAD), jnp.bfloat16),
        grid=(G,),
        in_specs=in_specs,
        out_specs=pl.BlockSpec((Bb, Tp, VOCAB_PAD), lambda g: (g, 0, 0)),
        compiler_params=pltpu.CompilerParams(dimension_semantics=("parallel",)),
    )(x, bias_tiled, hmask, gones, *weights)
    return out[:, :T, :VOCAB_SIZE].astype(jnp.float32)


def reference_forward(idx, params, weight_dtype=jnp.float32):
    """Pure-JAX reference mirroring the PyTorch module exactly (eval mode).

    weight_dtype=jnp.bfloat16 rounds matmul weights the same way the kernel's
    packed weights are rounded (math itself stays in f32)."""
    def _ln(h, g, b):
        mu = jnp.mean(h, axis=-1, keepdims=True)
        var = jnp.mean((h - mu) ** 2, axis=-1, keepdims=True)
        return (h - mu) * jax.lax.rsqrt(var + LN_EPS) * g + b

    wd = lambda w: w.astype(weight_dtype).astype(jnp.float32)
    B, T = idx.shape
    x = jnp.take(params["tok_emb"], idx, axis=0) + params["pos_emb"][:T][None]
    causal = jnp.tril(jnp.ones((T, T), bool))
    for l in range(NUM_LAYERS):
        h = _ln(x, params["ln1_g"][l], params["ln1_b"][l])
        q = h @ wd(params["wq"][l])
        k = h @ wd(params["wk"][l])
        v = h @ wd(params["wv"][l])
        rs = lambda a: a.reshape(B, T, NUM_HEADS, HEAD_SIZE).transpose(0, 2, 1, 3)
        q, k, v = rs(q), rs(k), rs(v)
        wei = jnp.einsum("bhqd,bhkd->bhqk", q, k) * (N_EMBD ** -0.5)  # full-D scale (as in ref)
        wei = jnp.where(causal, wei, -jnp.inf)
        wei = jax.nn.softmax(wei, axis=-1)
        o = jnp.einsum("bhqk,bhkd->bhqd", wei, v).transpose(0, 2, 1, 3).reshape(B, T, N_EMBD)
        x = x + o
        h2 = _ln(x, params["ln2_g"][l], params["ln2_b"][l])
        ff = jax.nn.relu(h2 @ wd(params["w1"][l]) + params["b1"][l]) @ wd(params["w2"][l]) + params["b2"][l]
        x = x + ff
    x = _ln(x, params["lnf_g"][0], params["lnf_b"][0])
    return x @ wd(params["wlm"]) + params["blm"][0]


if __name__ == "__main__":
    key = jax.random.PRNGKey(0)
    pkey, ikey = jax.random.split(key)
    params = make_params(pkey)

    B, T = 2, 8  # T <= block_size (32)
    idx = jax.random.randint(ikey, (B, T), 0, VOCAB_SIZE, dtype=jnp.int32)

    logits = jax.block_until_ready(bigram_lm_forward(idx, params))
    assert logits.shape == (B, T, VOCAB_SIZE)

    # Reference with identically-rounded (bf16) weights; the kernel additionally
    # rounds activations at each dot and emits bf16 logits, hence the loose-but-
    # meaningful tolerance.
    ref = reference_forward(idx, params, weight_dtype=jnp.bfloat16)
    assert jnp.allclose(logits, ref, atol=2e-2, rtol=2e-2), "mismatch vs pure-JAX reference"

    # TODO(synk): targets/cross-entropy loss path and multinomial generate() are
    # host-side conveniences and are not implemented in the kernel.
    print("KERNEL_OK")
</pallas_src>

<mosaic_0001>
module attributes {stable_mosaic.version = 11 : i64} {
  func.func @bigram_lm_kernel(%arg0: i32, %arg1: memref<2x8x64xf32, #tpu.memory_space<vmem>>, %arg2: memref<8x32xf32, #tpu.memory_space<vmem>>, %arg3: memref<32x64xf32, #tpu.memory_space<vmem>>, %arg4: memref<32x32xf32, #tpu.memory_space<vmem>>, %arg5: memref<3x64xf32, #tpu.memory_space<vmem>>, %arg6: memref<3x64xf32, #tpu.memory_space<vmem>>, %arg7: memref<3x64x192xbf16, #tpu.memory_space<vmem>>, %arg8: memref<3x64xf32, #tpu.memory_space<vmem>>, %arg9: memref<3x64xf32, #tpu.memory_space<vmem>>, %arg10: memref<3x64x256xbf16, #tpu.memory_space<vmem>>, %arg11: memref<3x256xf32, #tpu.memory_space<vmem>>, %arg12: memref<3x256x64xbf16, #tpu.memory_space<vmem>>, %arg13: memref<3x64xf32, #tpu.memory_space<vmem>>, %arg14: memref<1x64xf32, #tpu.memory_space<vmem>>, %arg15: memref<1x64xf32, #tpu.memory_space<vmem>>, %arg16: memref<64x128xbf16, #tpu.memory_space<vmem>>, %arg17: memref<1x128xf32, #tpu.memory_space<vmem>>, %arg18: memref<2x8x128xbf16, #tpu.memory_space<vmem>>) attributes {dimension_semantics = [#tpu.dimension_semantics<parallel>], iteration_bounds = array<i64: 1>, scalar_prefetch = 0 : i64, scratch_operands = 0 : i64, tpu.core_type = #tpu.core_type<tc>, window_params = [{transform_indices = @transform_0, window_bounds = array<i64: 2, 8, 64>}, {pipeline_mode = #tpu.pipeline_mode<synchronous>, transform_indices = @transform_1, window_bounds = array<i64: 8, 32>}, {pipeline_mode = #tpu.pipeline_mode<synchronous>, transform_indices = @transform_2, window_bounds = array<i64: 32, 64>}, {pipeline_mode = #tpu.pipeline_mode<synchronous>, transform_indices = @transform_3, window_bounds = array<i64: 32, 32>}, {pipeline_mode = #tpu.pipeline_mode<synchronous>, transform_indices = @transform_4, window_bounds = array<i64: 3, 64>}, {pipeline_mode = #tpu.pipeline_mode<synchronous>, transform_indices = @transform_5, window_bounds = array<i64: 3, 64>}, {pipeline_mode = #tpu.pipeline_mode<synchronous>, transform_indices = @transform_6, window_bounds = array<i64: 3, 64, 192>}, {pipeline_mode = #tpu.pipeline_mode<synchronous>, transform_indices = @transform_7, window_bounds = array<i64: 3, 64>}, {pipeline_mode = #tpu.pipeline_mode<synchronous>, transform_indices = @transform_8, window_bounds = array<i64: 3, 64>}, {pipeline_mode = #tpu.pipeline_mode<synchronous>, transform_indices = @transform_9, window_bounds = array<i64: 3, 64, 256>}, {pipeline_mode = #tpu.pipeline_mode<synchronous>, transform_indices = @transform_10, window_bounds = array<i64: 3, 256>}, {pipeline_mode = #tpu.pipeline_mode<synchronous>, transform_indices = @transform_11, window_bounds = array<i64: 3, 256, 64>}, {pipeline_mode = #tpu.pipeline_mode<synchronous>, transform_indices = @transform_12, window_bounds = array<i64: 3, 64>}, {pipeline_mode = #tpu.pipeline_mode<synchronous>, transform_indices = @transform_13, window_bounds = array<i64: 1, 64>}, {pipeline_mode = #tpu.pipeline_mode<synchronous>, transform_indices = @transform_14, window_bounds = array<i64: 1, 64>}, {pipeline_mode = #tpu.pipeline_mode<synchronous>, transform_indices = @transform_15, window_bounds = array<i64: 64, 128>}, {pipeline_mode = #tpu.pipeline_mode<synchronous>, transform_indices = @transform_16, window_bounds = array<i64: 1, 128>}, {transform_indices = @transform_17, window_bounds = array<i64: 2, 8, 128>}]} {
    %c0 = arith.constant 0 : index
    %c0_0 = arith.constant 0 : index
    %c0_1 = arith.constant 0 : index
    %0 = vector.load %arg1[%c0, %c0_0, %c0_1] : memref<2x8x64xf32, #tpu.memory_space<vmem>>, vector<2x8x64xf32>
    %1 = vector.shape_cast %0 : vector<2x8x64xf32> to vector<16x64xf32>
    %c0_2 = arith.constant 0 : index
    %c0_3 = arith.constant 0 : index
    %2 = vector.load %arg2[%c0_2, %c0_3] : memref<8x32xf32, #tpu.memory_space<vmem>>, vector<8x32xf32>
    %3 = vector.shape_cast %2 : vector<8x32xf32> to vector<1x8x32xf32>
    %4 = vector.broadcast %3 : vector<1x8x32xf32> to vector<2x8x32xf32>
    %c0_4 = arith.constant 0 : index
    %c0_5 = arith.constant 0 : index
    %5 = vector.load %arg3[%c0_4, %c0_5] : memref<32x64xf32, #tpu.memory_space<vmem>>, vector<32x64xf32>
    %6 = vector.shape_cast %5 : vector<32x64xf32> to vector<1x32x64xf32>
    %7 = vector.broadcast %6 : vector<1x32x64xf32> to vector<2x32x64xf32>
    %c0_6 = arith.constant 0 : index
    %c0_7 = arith.constant 0 : index
    %8 = vector.load %arg4[%c0_6, %c0_7] : memref<32x32xf32, #tpu.memory_space<vmem>>, vector<32x32xf32>
    %c0_8 = arith.constant 0 : index
    %c0_9 = arith.constant 0 : index
    %9 = vector.load %arg5[%c0_8, %c0_9] : memref<3x64xf32, #tpu.memory_space<vmem>>, vector<1x64xf32>
    %10 = vector.shape_cast %9 : vector<1x64xf32> to vector<64xf32>
    %c0_10 = arith.constant 0 : index
    %c0_11 = arith.constant 0 : index
    %11 = vector.load %arg6[%c0_10, %c0_11] : memref<3x64xf32, #tpu.memory_space<vmem>>, vector<1x64xf32>
    %12 = vector.shape_cast %11 : vector<1x64xf32> to vector<64xf32>
    %cst = arith.constant dense<0.000000e+00> : vector<16xf32>
    %13 = vector.multi_reduction <add>, %1, %cst [1] : vector<16x64xf32> to vector<16xf32>
    %14 = vector.shape_cast %13 : vector<16xf32> to vector<16x1xf32>
    %cst_12 = arith.constant 1.562500e-02 : f32
    %15 = vector.broadcast %cst_12 : f32 to vector<16x1xf32>
    %16 = arith.mulf %14, %15 : vector<16x1xf32>
    %17 = arith.mulf %1, %1 : vector<16x64xf32>
    %cst_13 = arith.constant dense<0.000000e+00> : vector<16xf32>
    %18 = vector.multi_reduction <add>, %17, %cst_13 [1] : vector<16x64xf32> to vector<16xf32>
    %19 = vector.shape_cast %18 : vector<16xf32> to vector<16x1xf32>
    %cst_14 = arith.constant 1.562500e-02 : f32
    %20 = vector.broadcast %cst_14 : f32 to vector<16x1xf32>
    %21 = arith.mulf %19, %20 : vector<16x1xf32>
    %22 = arith.mulf %16, %16 : vector<16x1xf32>
    %23 = arith.subf %21, %22 : vector<16x1xf32>
    %24 = vector.broadcast %16 : vector<16x1xf32> to vector<16x64xf32>
    %25 = arith.subf %1, %24 : vector<16x64xf32>
    %cst_15 = arith.constant 9.99999974E-6 : f32
    %26 = vector.broadcast %cst_15 : f32 to vector<16x1xf32>
    %27 = arith.addf %23, %26 : vector<16x1xf32>
    %28 = math.rsqrt %27 : vector<16x1xf32>
    %29 = vector.broadcast %28 : vector<16x1xf32> to vector<16x64xf32>
    %30 = arith.mulf %25, %29 : vector<16x64xf32>
    %31 = vector.shape_cast %10 : vector<64xf32> to vector<1x64xf32>
    %32 = vector.broadcast %31 : vector<1x64xf32> to vector<16x64xf32>
    %33 = arith.mulf %30, %32 : vector<16x64xf32>
    %34 = vector.shape_cast %12 : vector<64xf32> to vector<1x64xf32>
    %35 = vector.broadcast %34 : vector<1x64xf32> to vector<16x64xf32>
    %36 = arith.addf %33, %35 : vector<16x64xf32>
    %37 = arith.truncf %36 : vector<16x64xf32> to vector<16x64xbf16>
    %c0_16 = arith.constant 0 : index
    %c0_17 = arith.constant 0 : index
    %c0_18 = arith.constant 0 : index
    %38 = vector.load %arg7[%c0_16, %c0_17, %c0_18] : memref<3x64x192xbf16, #tpu.memory_space<vmem>>, vector<1x64x192xbf16>
    %39 = vector.shape_cast %38 : vector<1x64x192xbf16> to vector<64x192xbf16>
    %cst_19 = arith.constant dense<0.000000e+00> : vector<16x192xf32>
    %40 = tpu.matmul %37, %39, %cst_19 {dimension_numbers = #tpu.dot_dimension_numbers<[1], [0], [0], [1], [0, 0, 1, 1], [], []>} : vector<16x64xbf16>, vector<64x192xbf16>, vector<16x192xf32> -> vector<16x192xf32>
    %41 = vector.extract_strided_slice %40 {offsets = [0, 0], sizes = [16, 64], strides = [1, 1]} : vector<16x192xf32> to vector<16x64xf32>
    %42 = vector.shape_cast %41 : vector<16x64xf32> to vector<2x8x64xf32>
    %43 = arith.truncf %42 : vector<2x8x64xf32> to vector<2x8x64xbf16>
    %44 = vector.extract_strided_slice %40 {offsets = [0, 64], sizes = [16, 64], strides = [1, 1]} : vector<16x192xf32> to vector<16x64xf32>
    %45 = vector.shape_cast %44 : vector<16x64xf32> to vector<2x8x64xf32>
    %46 = vector.extract_strided_slice %40 {offsets = [0, 128], sizes = [16, 64], strides = [1, 1]} : vector<16x192xf32> to vector<16x64xf32>
    %47 = vector.shape_cast %46 : vector<16x64xf32> to vector<2x8x64xf32>
    %48 = tpu.concatenate %45, %45, %45, %45 in 1 : vector<2x8x64xf32>, vector<2x8x64xf32>, vector<2x8x64xf32>, vector<2x8x64xf32> -> vector<2x32x64xf32>
    %49 = arith.mulf %48, %7 : vector<2x32x64xf32>
    %50 = arith.truncf %49 : vector<2x32x64xf32> to vector<2x32x64xbf16>
    %51 = tpu.concatenate %47, %47, %47, %47 in 1 : vector<2x8x64xf32>, vector<2x8x64xf32>, vector<2x8x64xf32>, vector<2x8x64xf32> -> vector<2x32x64xf32>
    %52 = arith.mulf %51, %7 : vector<2x32x64xf32>
    %53 = arith.truncf %52 : vector<2x32x64xf32> to vector<2x32x64xbf16>
    "tpu.trace_start"() <{level = 10 : i32, message = "bqd,bkd->bqk"}> : () -> ()
    %cst_20 = arith.constant dense<0.000000e+00> : vector<2x8x32xf32>
    %54 = tpu.matmul %43, %50, %cst_20 {dimension_numbers = #tpu.dot_dimension_numbers<[2], [2], [1], [1], [0, 0, 0, 1, 1, 1], [0], [0]>} : vector<2x8x64xbf16>, vector<2x32x64xbf16>, vector<2x8x32xf32> -> vector<2x8x32xf32>
    "tpu.trace_stop"() : () -> ()
    %55 = arith.addf %54, %4 : vector<2x8x32xf32>
    %56 = math.exp %55 : vector<2x8x32xf32>
    %57 = vector.shape_cast %56 : vector<2x8x32xf32> to vector<16x32xf32>
    %cst_21 = arith.constant dense<0.000000e+00> : vector<16x32xf32>
    %58 = tpu.matmul %57, %8, %cst_21 {dimension_numbers = #tpu.dot_dimension_numbers<[1], [0], [0], [1], [0, 0, 1, 1], [], []>} : vector<16x32xf32>, vector<32x32xf32>, vector<16x32xf32> -> vector<16x32xf32>
    %59 = tpu.reciprocal %58 {approx = true} : vector<16x32xf32> -> vector<16x32xf32>
    %60 = arith.mulf %57, %59 : vector<16x32xf32>
    %61 = arith.truncf %60 : vector<16x32xf32> to vector<16x32xbf16>
    %62 = vector.shape_cast %61 : vector<16x32xbf16> to vector<2x8x32xbf16>
    "tpu.trace_start"() <{level = 10 : i32, message = "bqk,bkd->bqd"}> : () -> ()
    %cst_22 = arith.constant dense<0.000000e+00> : vector<2x8x64xf32>
    %63 = tpu.matmul %62, %53, %cst_22 {dimension_numbers = #tpu.dot_dimension_numbers<[2], [1], [1], [2], [0, 0, 0, 1, 1, 2], [0], [0]>} : vector<2x8x32xbf16>, vector<2x32x64xbf16>, vector<2x8x64xf32> -> vector<2x8x64xf32>
    "tpu.trace_stop"() : () -> ()
    %64 = vector.shape_cast %63 : vector<2x8x64xf32> to vector<16x64xf32>
    %65 = arith.addf %1, %64 : vector<16x64xf32>
    %c0_23 = arith.constant 0 : index
    %c0_24 = arith.constant 0 : index
    %66 = vector.load %arg8[%c0_23, %c0_24] : memref<3x64xf32, #tpu.memory_space<vmem>>, vector<1x64xf32>
    %67 = vector.shape_cast %66 : vector<1x64xf32> to vector<64xf32>
    %c0_25 = arith.constant 0 : index
    %c0_26 = arith.constant 0 : index
    %68 = vector.load %arg9[%c0_25, %c0_26] : memref<3x64xf32, #tpu.memory_space<vmem>>, vector<1x64xf32>
    %69 = vector.shape_cast %68 : vector<1x64xf32> to vector<64xf32>
    %cst_27 = arith.constant dense<0.000000e+00> : vector<16xf32>
    %70 = vector.multi_reduction <add>, %65, %cst_27 [1] : vector<16x64xf32> to vector<16xf32>
    %71 = vector.shape_cast %70 : vector<16xf32> to vector<16x1xf32>
    %cst_28 = arith.constant 1.562500e-02 : f32
    %72 = vector.broadcast %cst_28 : f32 to vector<16x1xf32>
    %73 = arith.mulf %71, %72 : vector<16x1xf32>
    %74 = arith.mulf %65, %65 : vector<16x64xf32>
    %cst_29 = arith.constant dense<0.000000e+00> : vector<16xf32>
    %75 = vector.multi_reduction <add>, %74, %cst_29 [1] : vector<16x64xf32> to vector<16xf32>
    %76 = vector.shape_cast %75 : vector<16xf32> to vector<16x1xf32>
    %cst_30 = arith.constant 1.562500e-02 : f32
    %77 = vector.broadcast %cst_30 : f32 to vector<16x1xf32>
    %78 = arith.mulf %76, %77 : vector<16x1xf32>
    %79 = arith.mulf %73, %73 : vector<16x1xf32>
    %80 = arith.subf %78, %79 : vector<16x1xf32>
    %81 = vector.broadcast %73 : vector<16x1xf32> to vector<16x64xf32>
    %82 = arith.subf %65, %81 : vector<16x64xf32>
    %cst_31 = arith.constant 9.99999974E-6 : f32
    %83 = vector.broadcast %cst_31 : f32 to vector<16x1xf32>
    %84 = arith.addf %80, %83 : vector<16x1xf32>
    %85 = math.rsqrt %84 : vector<16x1xf32>
    %86 = vector.broadcast %85 : vector<16x1xf32> to vector<16x64xf32>
    %87 = arith.mulf %82, %86 : vector<16x64xf32>
    %88 = vector.shape_cast %67 : vector<64xf32> to vector<1x64xf32>
    %89 = vector.broadcast %88 : vector<1x64xf32> to vector<16x64xf32>
    %90 = arith.mulf %87, %89 : vector<16x64xf32>
    %91 = vector.shape_cast %69 : vector<64xf32> to vector<1x64xf32>
    %92 = vector.broadcast %91 : vector<1x64xf32> to vector<16x64xf32>
    %93 = arith.addf %90, %92 : vector<16x64xf32>
    %94 = arith.truncf %93 : vector<16x64xf32> to vector<16x64xbf16>
    %c0_32 = arith.constant 0 : index
    %c0_33 = arith.constant 0 : index
    %c0_34 = arith.constant 0 : index
    %95 = vector.load %arg10[%c0_32, %c0_33, %c0_34] : memref<3x64x256xbf16, #tpu.memory_space<vmem>>, vector<1x64x256xbf16>
    %96 = vector.shape_cast %95 : vector<1x64x256xbf16> to vector<64x256xbf16>
    %cst_35 = arith.constant dense<0.000000e+00> : vector<16x256xf32>
    %97 = tpu.matmul %94, %96, %cst_35 {dimension_numbers = #tpu.dot_dimension_numbers<[1], [0], [0], [1], [0, 0, 1, 1], [], []>} : vector<16x64xbf16>, vector<64x256xbf16>, vector<16x256xf32> -> vector<16x256xf32>
    %c0_36 = arith.constant 0 : index
    %c0_37 = arith.constant 0 : index
    %98 = vector.load %arg11[%c0_36, %c0_37] : memref<3x256xf32, #tpu.memory_space<vmem>>, vector<1x256xf32>
    %99 = vector.shape_cast %98 : vector<1x256xf32> to vector<256xf32>
    %100 = vector.shape_cast %99 : vector<256xf32> to vector<1x256xf32>
    %101 = vector.broadcast %100 : vector<1x256xf32> to vector<16x256xf32>
    %102 = arith.addf %97, %101 : vector<16x256xf32>
    %cst_38 = arith.constant 0.000000e+00 : f32
    %103 = vector.broadcast %cst_38 : f32 to vector<16x256xf32>
    %104 = arith.maximumf %102, %103 : vector<16x256xf32>
    %105 = arith.truncf %104 : vector<16x256xf32> to vector<16x256xbf16>
    %c0_39 = arith.constant 0 : index
    %c0_40 = arith.constant 0 : index
    %c0_41 = arith.constant 0 : index
    %106 = vector.load %arg12[%c0_39, %c0_40, %c0_41] : memref<3x256x64xbf16, #tpu.memory_space<vmem>>, vector<1x256x64xbf16>
    %107 = vector.shape_cast %106 : vector<1x256x64xbf16> to vector<256x64xbf16>
    %cst_42 = arith.constant dense<0.000000e+00> : vector<16x64xf32>
    %108 = tpu.matmul %105, %107, %cst_42 {dimension_numbers = #tpu.dot_dimension_numbers<[1], [0], [0], [1], [0, 0, 1, 1], [], []>} : vector<16x256xbf16>, vector<256x64xbf16>, vector<16x64xf32> -> vector<16x64xf32>
    %c0_43 = arith.constant 0 : index
    %c0_44 = arith.constant 0 : index
    %109 = vector.load %arg13[%c0_43, %c0_44] : memref<3x64xf32, #tpu.memory_space<vmem>>, vector<1x64xf32>
    %110 = vector.shape_cast %109 : vector<1x64xf32> to vector<64xf32>
    %111 = vector.shape_cast %110 : vector<64xf32> to vector<1x64xf32>
    %112 = vector.broadcast %111 : vector<1x64xf32> to vector<16x64xf32>
    %113 = arith.addf %108, %112 : vector<16x64xf32>
    %114 = arith.addf %65, %113 : vector<16x64xf32>
    %c1 = arith.constant 1 : index
    %c0_45 = arith.constant 0 : index
    %115 = vector.load %arg5[%c1, %c0_45] : memref<3x64xf32, #tpu.memory_space<vmem>>, vector<1x64xf32>
    %116 = vector.shape_cast %115 : vector<1x64xf32> to vector<64xf32>
    %c1_46 = arith.constant 1 : index
    %c0_47 = arith.constant 0 : index
    %117 = vector.load %arg6[%c1_46, %c0_47] : memref<3x64xf32, #tpu.memory_space<vmem>>, vector<1x64xf32>
    %118 = vector.shape_cast %117 : vector<1x64xf32> to vector<64xf32>
    %cst_48 = arith.constant dense<0.000000e+00> : vector<16xf32>
    %119 = vector.multi_reduction <add>, %114, %cst_48 [1] : vector<16x64xf32> to vector<16xf32>
    %120 = vector.shape_cast %119 : vector<16xf32> to vector<16x1xf32>
    %cst_49 = arith.constant 1.562500e-02 : f32
    %121 = vector.broadcast %cst_49 : f32 to vector<16x1xf32>
    %122 = arith.mulf %120, %121 : vector<16x1xf32>
    %123 = arith.mulf %114, %114 : vector<16x64xf32>
    %cst_50 = arith.constant dense<0.000000e+00> : vector<16xf32>
    %124 = vector.multi_reduction <add>, %123, %cst_50 [1] : vector<16x64xf32> to vector<16xf32>
    %125 = vector.shape_cast %124 : vector<16xf32> to vector<16x1xf32>
    %cst_51 = arith.constant 1.562500e-02 : f32
    %126 = vector.broadcast %cst_51 : f32 to vector<16x1xf32>
    %127 = arith.mulf %125, %126 : vector<16x1xf32>
    %128 = arith.mulf %122, %122 : vector<16x1xf32>
    %129 = arith.subf %127, %128 : vector<16x1xf32>
    %130 = vector.broadcast %122 : vector<16x1xf32> to vector<16x64xf32>
    %131 = arith.subf %114, %130 : vector<16x64xf32>
    %cst_52 = arith.constant 9.99999974E-6 : f32
    %132 = vector.broadcast %cst_52 : f32 to vector<16x1xf32>
    %133 = arith.addf %129, %132 : vector<16x1xf32>
    %134 = math.rsqrt %133 : vector<16x1xf32>
    %135 = vector.broadcast %134 : vector<16x1xf32> to vector<16x64xf32>
    %136 = arith.mulf %131, %135 : vector<16x64xf32>
    %137 = vector.shape_cast %116 : vector<64xf32> to vector<1x64xf32>
    %138 = vector.broadcast %137 : vector<1x64xf32> to vector<16x64xf32>
    %139 = arith.mulf %136, %138 : vector<16x64xf32>
    %140 = vector.shape_cast %118 : vector<64xf32> to vector<1x64xf32>
    %141 = vector.broadcast %140 : vector<1x64xf32> to vector<16x64xf32>
    %142 = arith.addf %139, %141 : vector<16x64xf32>
    %143 = arith.truncf %142 : vector<16x64xf32> to vector<16x64xbf16>
    %c1_53 = arith.constant 1 : index
    %c0_54 = arith.constant 0 : index
    %c0_55 = arith.constant 0 : index
    %144 = vector.load %arg7[%c1_53, %c0_54, %c0_55] : memref<3x64x192xbf16, #tpu.memory_space<vmem>>, vector<1x64x192xbf16>
    %145 = vector.shape_cast %144 : vector<1x64x192xbf16> to vector<64x192xbf16>
    %cst_56 = arith.constant dense<0.000000e+00> : vector<16x192xf32>
    %146 = tpu.matmul %143, %145, %cst_56 {dimension_numbers = #tpu.dot_dimension_numbers<[1], [0], [0], [1], [0, 0, 1, 1], [], []>} : vector<16x64xbf16>, vector<64x192xbf16>, vector<16x192xf32> -> vector<16x192xf32>
    %147 = vector.extract_strided_slice %146 {offsets = [0, 0], sizes = [16, 64], strides = [1, 1]} : vector<16x192xf32> to vector<16x64xf32>
    %148 = vector.shape_cast %147 : vector<16x64xf32> to vector<2x8x64xf32>
    %149 = arith.truncf %148 : vector<2x8x64xf32> to vector<2x8x64xbf16>
    %150 = vector.extract_strided_slice %146 {offsets = [0, 64], sizes = [16, 64], strides = [1, 1]} : vector<16x192xf32> to vector<16x64xf32>
    %151 = vector.shape_cast %150 : vector<16x64xf32> to vector<2x8x64xf32>
    %152 = vector.extract_strided_slice %146 {offsets = [0, 128], sizes = [16, 64], strides = [1, 1]} : vector<16x192xf32> to vector<16x64xf32>
    %153 = vector.shape_cast %152 : vector<16x64xf32> to vector<2x8x64xf32>
    %154 = tpu.concatenate %151, %151, %151, %151 in 1 : vector<2x8x64xf32>, vector<2x8x64xf32>, vector<2x8x64xf32>, vector<2x8x64xf32> -> vector<2x32x64xf32>
    %155 = arith.mulf %154, %7 : vector<2x32x64xf32>
    %156 = arith.truncf %155 : vector<2x32x64xf32> to vector<2x32x64xbf16>
    %157 = tpu.concatenate %153, %153, %153, %153 in 1 : vector<2x8x64xf32>, vector<2x8x64xf32>, vector<2x8x64xf32>, vector<2x8x64xf32> -> vector<2x32x64xf32>
    %158 = arith.mulf %157, %7 : vector<2x32x64xf32>
    %159 = arith.truncf %158 : vector<2x32x64xf32> to vector<2x32x64xbf16>
    "tpu.trace_start"() <{level = 10 : i32, message = "bqd,bkd->bqk"}> : () -> ()
    %cst_57 = arith.constant dense<0.000000e+00> : vector<2x8x32xf32>
    %160 = tpu.matmul %149, %156, %cst_57 {dimension_numbers = #tpu.dot_dimension_numbers<[2], [2], [1], [1], [0, 0, 0, 1, 1, 1], [0], [0]>} : vector<2x8x64xbf16>, vector<2x32x64xbf16>, vector<2x8x32xf32> -> vector<2x8x32xf32>
    "tpu.trace_stop"() : () -> ()
    %161 = arith.addf %160, %4 : vector<2x8x32xf32>
    %162 = math.exp %161 : vector<2x8x32xf32>
    %163 = vector.shape_cast %162 : vector<2x8x32xf32> to vector<16x32xf32>
    %cst_58 = arith.constant dense<0.000000e+00> : vector<16x32xf32>
    %164 = tpu.matmul %163, %8, %cst_58 {dimension_numbers = #tpu.dot_dimension_numbers<[1], [0], [0], [1], [0, 0, 1, 1], [], []>} : vector<16x32xf32>, vector<32x32xf32>, vector<16x32xf32> -> vector<16x32xf32>
    %165 = tpu.reciprocal %164 {approx = true} : vector<16x32xf32> -> vector<16x32xf32>
    %166 = arith.mulf %163, %165 : vector<16x32xf32>
    %167 = arith.truncf %166 : vector<16x32xf32> to vector<16x32xbf16>
    %168 = vector.shape_cast %167 : vector<16x32xbf16> to vector<2x8x32xbf16>
    "tpu.trace_start"() <{level = 10 : i32, message = "bqk,bkd->bqd"}> : () -> ()
    %cst_59 = arith.constant dense<0.000000e+00> : vector<2x8x64xf32>
    %169 = tpu.matmul %168, %159, %cst_59 {dimension_numbers = #tpu.dot_dimension_numbers<[2], [1], [1], [2], [0, 0, 0, 1, 1, 2], [0], [0]>} : vector<2x8x32xbf16>, vector<2x32x64xbf16>, vector<2x8x64xf32> -> vector<2x8x64xf32>
    "tpu.trace_stop"() : () -> ()
    %170 = vector.shape_cast %169 : vector<2x8x64xf32> to vector<16x64xf32>
    %171 = arith.addf %114, %170 : vector<16x64xf32>
    %c1_60 = arith.constant 1 : index
    %c0_61 = arith.constant 0 : index
    %172 = vector.load %arg8[%c1_60, %c0_61] : memref<3x64xf32, #tpu.memory_space<vmem>>, vector<1x64xf32>
    %173 = vector.shape_cast %172 : vector<1x64xf32> to vector<64xf32>
    %c1_62 = arith.constant 1 : index
    %c0_63 = arith.constant 0 : index
    %174 = vector.load %arg9[%c1_62, %c0_63] : memref<3x64xf32, #tpu.memory_space<vmem>>, vector<1x64xf32>
    %175 = vector.shape_cast %174 : vector<1x64xf32> to vector<64xf32>
    %cst_64 = arith.constant dense<0.000000e+00> : vector<16xf32>
    %176 = vector.multi_reduction <add>, %171, %cst_64 [1] : vector<16x64xf32> to vector<16xf32>
    %177 = vector.shape_cast %176 : vector<16xf32> to vector<16x1xf32>
    %cst_65 = arith.constant 1.562500e-02 : f32
    %178 = vector.broadcast %cst_65 : f32 to vector<16x1xf32>
    %179 = arith.mulf %177, %178 : vector<16x1xf32>
    %180 = arith.mulf %171, %171 : vector<16x64xf32>
    %cst_66 = arith.constant dense<0.000000e+00> : vector<16xf32>
    %181 = vector.multi_reduction <add>, %180, %cst_66 [1] : vector<16x64xf32> to vector<16xf32>
    %182 = vector.shape_cast %181 : vector<16xf32> to vector<16x1xf32>
    %cst_67 = arith.constant 1.562500e-02 : f32
    %183 = vector.broadcast %cst_67 : f32 to vector<16x1xf32>
    %184 = arith.mulf %182, %183 : vector<16x1xf32>
    %185 = arith.mulf %179, %179 : vector<16x1xf32>
    %186 = arith.subf %184, %185 : vector<16x1xf32>
    %187 = vector.broadcast %179 : vector<16x1xf32> to vector<16x64xf32>
    %188 = arith.subf %171, %187 : vector<16x64xf32>
    %cst_68 = arith.constant 9.99999974E-6 : f32
    %189 = vector.broadcast %cst_68 : f32 to vector<16x1xf32>
    %190 = arith.addf %186, %189 : vector<16x1xf32>
    %191 = math.rsqrt %190 : vector<16x1xf32>
    %192 = vector.broadcast %191 : vector<16x1xf32> to vector<16x64xf32>
    %193 = arith.mulf %188, %192 : vector<16x64xf32>
    %194 = vector.shape_cast %173 : vector<64xf32> to vector<1x64xf32>
    %195 = vector.broadcast %194 : vector<1x64xf32> to vector<16x64xf32>
    %196 = arith.mulf %193, %195 : vector<16x64xf32>
    %197 = vector.shape_cast %175 : vector<64xf32> to vector<1x64xf32>
    %198 = vector.broadcast %197 : vector<1x64xf32> to vector<16x64xf32>
    %199 = arith.addf %196, %198 : vector<16x64xf32>
    %200 = arith.truncf %199 : vector<16x64xf32> to vector<16x64xbf16>
    %c1_69 = arith.constant 1 : index
    %c0_70 = arith.constant 0 : index
    %c0_71 = arith.constant 0 : index
    %201 = vector.load %arg10[%c1_69, %c0_70, %c0_71] : memref<3x64x256xbf16, #tpu.memory_space<vmem>>, vector<1x64x256xbf16>
    %202 = vector.shape_cast %201 : vector<1x64x256xbf16> to vector<64x256xbf16>
    %cst_72 = arith.constant dense<0.000000e+00> : vector<16x256xf32>
    %203 = tpu.matmul %200, %202, %cst_72 {dimension_numbers = #tpu.dot_dimension_numbers<[1], [0], [0], [1], [0, 0, 1, 1], [], []>} : vector<16x64xbf16>, vector<64x256xbf16>, vector<16x256xf32> -> vector<16x256xf32>
    %c1_73 = arith.constant 1 : index
    %c0_74 = arith.constant 0 : index
    %204 = vector.load %arg11[%c1_73, %c0_74] : memref<3x256xf32, #tpu.memory_space<vmem>>, vector<1x256xf32>
    %205 = vector.shape_cast %204 : vector<1x256xf32> to vector<256xf32>
    %206 = vector.shape_cast %205 : vector<256xf32> to vector<1x256xf32>
    %207 = vector.broadcast %206 : vector<1x256xf32> to vector<16x256xf32>
    %208 = arith.addf %203, %207 : vector<16x256xf32>
    %cst_75 = arith.constant 0.000000e+00 : f32
    %209 = vector.broadcast %cst_75 : f32 to vector<16x256xf32>
    %210 = arith.maximumf %208, %209 : vector<16x256xf32>
    %211 = arith.truncf %210 : vector<16x256xf32> to vector<16x256xbf16>
    %c1_76 = arith.constant 1 : index
    %c0_77 = arith.constant 0 : index
    %c0_78 = arith.constant 0 : index
    %212 = vector.load %arg12[%c1_76, %c0_77, %c0_78] : memref<3x256x64xbf16, #tpu.memory_space<vmem>>, vector<1x256x64xbf16>
    %213 = vector.shape_cast %212 : vector<1x256x64xbf16> to vector<256x64xbf16>
    %cst_79 = arith.constant dense<0.000000e+00> : vector<16x64xf32>
    %214 = tpu.matmul %211, %213, %cst_79 {dimension_numbers = #tpu.dot_dimension_numbers<[1], [0], [0], [1], [0, 0, 1, 1], [], []>} : vector<16x256xbf16>, vector<256x64xbf16>, vector<16x64xf32> -> vector<16x64xf32>
    %c1_80 = arith.constant 1 : index
    %c0_81 = arith.constant 0 : index
    %215 = vector.load %arg13[%c1_80, %c0_81] : memref<3x64xf32, #tpu.memory_space<vmem>>, vector<1x64xf32>
    %216 = vector.shape_cast %215 : vector<1x64xf32> to vector<64xf32>
    %217 = vector.shape_cast %216 : vector<64xf32> to vector<1x64xf32>
    %218 = vector.broadcast %217 : vector<1x64xf32> to vector<16x64xf32>
    %219 = arith.addf %214, %218 : vector<16x64xf32>
    %220 = arith.addf %171, %219 : vector<16x64xf32>
    %c2 = arith.constant 2 : index
    %c0_82 = arith.constant 0 : index
    %221 = vector.load %arg5[%c2, %c0_82] : memref<3x64xf32, #tpu.memory_space<vmem>>, vector<1x64xf32>
    %222 = vector.shape_cast %221 : vector<1x64xf32> to vector<64xf32>
    %c2_83 = arith.constant 2 : index
    %c0_84 = arith.constant 0 : index
    %223 = vector.load %arg6[%c2_83, %c0_84] : memref<3x64xf32, #tpu.memory_space<vmem>>, vector<1x64xf32>
    %224 = vector.shape_cast %223 : vector<1x64xf32> to vector<64xf32>
    %cst_85 = arith.constant dense<0.000000e+00> : vector<16xf32>
    %225 = vector.multi_reduction <add>, %220, %cst_85 [1] : vector<16x64xf32> to vector<16xf32>
    %226 = vector.shape_cast %225 : vector<16xf32> to vector<16x1xf32>
    %cst_86 = arith.constant 1.562500e-02 : f32
    %227 = vector.broadcast %cst_86 : f32 to vector<16x1xf32>
    %228 = arith.mulf %226, %227 : vector<16x1xf32>
    %229 = arith.mulf %220, %220 : vector<16x64xf32>
    %cst_87 = arith.constant dense<0.000000e+00> : vector<16xf32>
    %230 = vector.multi_reduction <add>, %229, %cst_87 [1] : vector<16x64xf32> to vector<16xf32>
    %231 = vector.shape_cast %230 : vector<16xf32> to vector<16x1xf32>
    %cst_88 = arith.constant 1.562500e-02 : f32
    %232 = vector.broadcast %cst_88 : f32 to vector<16x1xf32>
    %233 = arith.mulf %231, %232 : vector<16x1xf32>
    %234 = arith.mulf %228, %228 : vector<16x1xf32>
    %235 = arith.subf %233, %234 : vector<16x1xf32>
    %236 = vector.broadcast %228 : vector<16x1xf32> to vector<16x64xf32>
    %237 = arith.subf %220, %236 : vector<16x64xf32>
    %cst_89 = arith.constant 9.99999974E-6 : f32
    %238 = vector.broadcast %cst_89 : f32 to vector<16x1xf32>
    %239 = arith.addf %235, %238 : vector<16x1xf32>
    %240 = math.rsqrt %239 : vector<16x1xf32>
    %241 = vector.broadcast %240 : vector<16x1xf32> to vector<16x64xf32>
    %242 = arith.mulf %237, %241 : vector<16x64xf32>
    %243 = vector.shape_cast %222 : vector<64xf32> to vector<1x64xf32>
    %244 = vector.broadcast %243 : vector<1x64xf32> to vector<16x64xf32>
    %245 = arith.mulf %242, %244 : vector<16x64xf32>
    %246 = vector.shape_cast %224 : vector<64xf32> to vector<1x64xf32>
    %247 = vector.broadcast %246 : vector<1x64xf32> to vector<16x64xf32>
    %248 = arith.addf %245, %247 : vector<16x64xf32>
    %249 = arith.truncf %248 : vector<16x64xf32> to vector<16x64xbf16>
    %c2_90 = arith.constant 2 : index
    %c0_91 = arith.constant 0 : index
    %c0_92 = arith.constant 0 : index
    %250 = vector.load %arg7[%c2_90, %c0_91, %c0_92] : memref<3x64x192xbf16, #tpu.memory_space<vmem>>, vector<1x64x192xbf16>
    %251 = vector.shape_cast %250 : vector<1x64x192xbf16> to vector<64x192xbf16>
    %cst_93 = arith.constant dense<0.000000e+00> : vector<16x192xf32>
    %252 = tpu.matmul %249, %251, %cst_93 {dimension_numbers = #tpu.dot_dimension_numbers<[1], [0], [0], [1], [0, 0, 1, 1], [], []>} : vector<16x64xbf16>, vector<64x192xbf16>, vector<16x192xf32> -> vector<16x192xf32>
    %253 = vector.extract_strided_slice %252 {offsets = [0, 0], sizes = [16, 64], strides = [1, 1]} : vector<16x192xf32> to vector<16x64xf32>
    %254 = vector.shape_cast %253 : vector<16x64xf32> to vector<2x8x64xf32>
    %255 = arith.truncf %254 : vector<2x8x64xf32> to vector<2x8x64xbf16>
    %256 = vector.extract_strided_slice %252 {offsets = [0, 64], sizes = [16, 64], strides = [1, 1]} : vector<16x192xf32> to vector<16x64xf32>
    %257 = vector.shape_cast %256 : vector<16x64xf32> to vector<2x8x64xf32>
    %258 = vector.extract_strided_slice %252 {offsets = [0, 128], sizes = [16, 64], strides = [1, 1]} : vector<16x192xf32> to vector<16x64xf32>
    %259 = vector.shape_cast %258 : vector<16x64xf32> to vector<2x8x64xf32>
    %260 = tpu.concatenate %257, %257, %257, %257 in 1 : vector<2x8x64xf32>, vector<2x8x64xf32>, vector<2x8x64xf32>, vector<2x8x64xf32> -> vector<2x32x64xf32>
    %261 = arith.mulf %260, %7 : vector<2x32x64xf32>
    %262 = arith.truncf %261 : vector<2x32x64xf32> to vector<2x32x64xbf16>
    %263 = tpu.concatenate %259, %259, %259, %259 in 1 : vector<2x8x64xf32>, vector<2x8x64xf32>, vector<2x8x64xf32>, vector<2x8x64xf32> -> vector<2x32x64xf32>
    %264 = arith.mulf %263, %7 : vector<2x32x64xf32>
    %265 = arith.truncf %264 : vector<2x32x64xf32> to vector<2x32x64xbf16>
    "tpu.trace_start"() <{level = 10 : i32, message = "bqd,bkd->bqk"}> : () -> ()
    %cst_94 = arith.constant dense<0.000000e+00> : vector<2x8x32xf32>
    %266 = tpu.matmul %255, %262, %cst_94 {dimension_numbers = #tpu.dot_dimension_numbers<[2], [2], [1], [1], [0, 0, 0, 1, 1, 1], [0], [0]>} : vector<2x8x64xbf16>, vector<2x32x64xbf16>, vector<2x8x32xf32> -> vector<2x8x32xf32>
    "tpu.trace_stop"() : () -> ()
    %267 = arith.addf %266, %4 : vector<2x8x32xf32>
    %268 = math.exp %267 : vector<2x8x32xf32>
    %269 = vector.shape_cast %268 : vector<2x8x32xf32> to vector<16x32xf32>
    %cst_95 = arith.constant dense<0.000000e+00> : vector<16x32xf32>
    %270 = tpu.matmul %269, %8, %cst_95 {dimension_numbers = #tpu.dot_dimension_numbers<[1], [0], [0], [1], [0, 0, 1, 1], [], []>} : vector<16x32xf32>, vector<32x32xf32>, vector<16x32xf32> -> vector<16x32xf32>
    %271 = tpu.reciprocal %270 {approx = true} : vector<16x32xf32> -> vector<16x32xf32>
    %272 = arith.mulf %269, %271 : vector<16x32xf32>
    %273 = arith.truncf %272 : vector<16x32xf32> to vector<16x32xbf16>
    %274 = vector.shape_cast %273 : vector<16x32xbf16> to vector<2x8x32xbf16>
    "tpu.trace_start"() <{level = 10 : i32, message = "bqk,bkd->bqd"}> : () -> ()
    %cst_96 = arith.constant dense<0.000000e+00> : vector<2x8x64xf32>
    %275 = tpu.matmul %274, %265, %cst_96 {dimension_numbers = #tpu.dot_dimension_numbers<[2], [1], [1], [2], [0, 0, 0, 1, 1, 2], [0], [0]>} : vector<2x8x32xbf16>, vector<2x32x64xbf16>, vector<2x8x64xf32> -> vector<2x8x64xf32>
    "tpu.trace_stop"() : () -> ()
    %276 = vector.shape_cast %275 : vector<2x8x64xf32> to vector<16x64xf32>
    %277 = arith.addf %220, %276 : vector<16x64xf32>
    %c2_97 = arith.constant 2 : index
    %c0_98 = arith.constant 0 : index
    %278 = vector.load %arg8[%c2_97, %c0_98] : memref<3x64xf32, #tpu.memory_space<vmem>>, vector<1x64xf32>
    %279 = vector.shape_cast %278 : vector<1x64xf32> to vector<64xf32>
    %c2_99 = arith.constant 2 : index
    %c0_100 = arith.constant 0 : index
    %280 = vector.load %arg9[%c2_99, %c0_100] : memref<3x64xf32, #tpu.memory_space<vmem>>, vector<1x64xf32>
    %281 = vector.shape_cast %280 : vector<1x64xf32> to vector<64xf32>
    %cst_101 = arith.constant dense<0.000000e+00> : vector<16xf32>
    %282 = vector.multi_reduction <add>, %277, %cst_101 [1] : vector<16x64xf32> to vector<16xf32>
    %283 = vector.shape_cast %282 : vector<16xf32> to vector<16x1xf32>
    %cst_102 = arith.constant 1.562500e-02 : f32
    %284 = vector.broadcast %cst_102 : f32 to vector<16x1xf32>
    %285 = arith.mulf %283, %284 : vector<16x1xf32>
    %286 = arith.mulf %277, %277 : vector<16x64xf32>
    %cst_103 = arith.constant dense<0.000000e+00> : vector<16xf32>
    %287 = vector.multi_reduction <add>, %286, %cst_103 [1] : vector<16x64xf32> to vector<16xf32>
    %288 = vector.shape_cast %287 : vector<16xf32> to vector<16x1xf32>
    %cst_104 = arith.constant 1.562500e-02 : f32
    %289 = vector.broadcast %cst_104 : f32 to vector<16x1xf32>
    %290 = arith.mulf %288, %289 : vector<16x1xf32>
    %291 = arith.mulf %285, %285 : vector<16x1xf32>
    %292 = arith.subf %290, %291 : vector<16x1xf32>
    %293 = vector.broadcast %285 : vector<16x1xf32> to vector<16x64xf32>
    %294 = arith.subf %277, %293 : vector<16x64xf32>
    %cst_105 = arith.constant 9.99999974E-6 : f32
    %295 = vector.broadcast %cst_105 : f32 to vector<16x1xf32>
    %296 = arith.addf %292, %295 : vector<16x1xf32>
    %297 = math.rsqrt %296 : vector<16x1xf32>
    %298 = vector.broadcast %297 : vector<16x1xf32> to vector<16x64xf32>
    %299 = arith.mulf %294, %298 : vector<16x64xf32>
    %300 = vector.shape_cast %279 : vector<64xf32> to vector<1x64xf32>
    %301 = vector.broadcast %300 : vector<1x64xf32> to vector<16x64xf32>
    %302 = arith.mulf %299, %301 : vector<16x64xf32>
    %303 = vector.shape_cast %281 : vector<64xf32> to vector<1x64xf32>
    %304 = vector.broadcast %303 : vector<1x64xf32> to vector<16x64xf32>
    %305 = arith.addf %302, %304 : vector<16x64xf32>
    %306 = arith.truncf %305 : vector<16x64xf32> to vector<16x64xbf16>
    %c2_106 = arith.constant 2 : index
    %c0_107 = arith.constant 0 : index
    %c0_108 = arith.constant 0 : index
    %307 = vector.load %arg10[%c2_106, %c0_107, %c0_108] : memref<3x64x256xbf16, #tpu.memory_space<vmem>>, vector<1x64x256xbf16>
    %308 = vector.shape_cast %307 : vector<1x64x256xbf16> to vector<64x256xbf16>
    %cst_109 = arith.constant dense<0.000000e+00> : vector<16x256xf32>
    %309 = tpu.matmul %306, %308, %cst_109 {dimension_numbers = #tpu.dot_dimension_numbers<[1], [0], [0], [1], [0, 0, 1, 1], [], []>} : vector<16x64xbf16>, vector<64x256xbf16>, vector<16x256xf32> -> vector<16x256xf32>
    %c2_110 = arith.constant 2 : index
    %c0_111 = arith.constant 0 : index
    %310 = vector.load %arg11[%c2_110, %c0_111] : memref<3x256xf32, #tpu.memory_space<vmem>>, vector<1x256xf32>
    %311 = vector.shape_cast %310 : vector<1x256xf32> to vector<256xf32>
    %312 = vector.shape_cast %311 : vector<256xf32> to vector<1x256xf32>
    %313 = vector.broadcast %312 : vector<1x256xf32> to vector<16x256xf32>
    %314 = arith.addf %309, %313 : vector<16x256xf32>
    %cst_112 = arith.constant 0.000000e+00 : f32
    %315 = vector.broadcast %cst_112 : f32 to vector<16x256xf32>
    %316 = arith.maximumf %314, %315 : vector<16x256xf32>
    %317 = arith.truncf %316 : vector<16x256xf32> to vector<16x256xbf16>
    %c2_113 = arith.constant 2 : index
    %c0_114 = arith.constant 0 : index
    %c0_115 = arith.constant 0 : index
    %318 = vector.load %arg12[%c2_113, %c0_114, %c0_115] : memref<3x256x64xbf16, #tpu.memory_space<vmem>>, vector<1x256x64xbf16>
    %319 = vector.shape_cast %318 : vector<1x256x64xbf16> to vector<256x64xbf16>
    %cst_116 = arith.constant dense<0.000000e+00> : vector<16x64xf32>
    %320 = tpu.matmul %317, %319, %cst_116 {dimension_numbers = #tpu.dot_dimension_numbers<[1], [0], [0], [1], [0, 0, 1, 1], [], []>} : vector<16x256xbf16>, vector<256x64xbf16>, vector<16x64xf32> -> vector<16x64xf32>
    %c2_117 = arith.constant 2 : index
    %c0_118 = arith.constant 0 : index
    %321 = vector.load %arg13[%c2_117, %c0_118] : memref<3x64xf32, #tpu.memory_space<vmem>>, vector<1x64xf32>
    %322 = vector.shape_cast %321 : vector<1x64xf32> to vector<64xf32>
    %323 = vector.shape_cast %322 : vector<64xf32> to vector<1x64xf32>
    %324 = vector.broadcast %323 : vector<1x64xf32> to vector<16x64xf32>
    %325 = arith.addf %320, %324 : vector<16x64xf32>
    %326 = arith.addf %277, %325 : vector<16x64xf32>
    %c0_119 = arith.constant 0 : index
    %c0_120 = arith.constant 0 : index
    %327 = vector.load %arg14[%c0_119, %c0_120] : memref<1x64xf32, #tpu.memory_space<vmem>>, vector<1x64xf32>
    %328 = vector.shape_cast %327 : vector<1x64xf32> to vector<64xf32>
    %c0_121 = arith.constant 0 : index
    %c0_122 = arith.constant 0 : index
    %329 = vector.load %arg15[%c0_121, %c0_122] : memref<1x64xf32, #tpu.memory_space<vmem>>, vector<1x64xf32>
    %330 = vector.shape_cast %329 : vector<1x64xf32> to vector<64xf32>
    %cst_123 = arith.constant dense<0.000000e+00> : vector<16xf32>
    %331 = vector.multi_reduction <add>, %326, %cst_123 [1] : vector<16x64xf32> to vector<16xf32>
    %332 = vector.shape_cast %331 : vector<16xf32> to vector<16x1xf32>
    %cst_124 = arith.constant 1.562500e-02 : f32
    %333 = vector.broadcast %cst_124 : f32 to vector<16x1xf32>
    %334 = arith.mulf %332, %333 : vector<16x1xf32>
    %335 = arith.mulf %326, %326 : vector<16x64xf32>
    %cst_125 = arith.constant dense<0.000000e+00> : vector<16xf32>
    %336 = vector.multi_reduction <add>, %335, %cst_125 [1] : vector<16x64xf32> to vector<16xf32>
    %337 = vector.shape_cast %336 : vector<16xf32> to vector<16x1xf32>
    %cst_126 = arith.constant 1.562500e-02 : f32
    %338 = vector.broadcast %cst_126 : f32 to vector<16x1xf32>
    %339 = arith.mulf %337, %338 : vector<16x1xf32>
    %340 = arith.mulf %334, %334 : vector<16x1xf32>
    %341 = arith.subf %339, %340 : vector<16x1xf32>
    %342 = vector.broadcast %334 : vector<16x1xf32> to vector<16x64xf32>
    %343 = arith.subf %326, %342 : vector<16x64xf32>
    %cst_127 = arith.constant 9.99999974E-6 : f32
    %344 = vector.broadcast %cst_127 : f32 to vector<16x1xf32>
    %345 = arith.addf %341, %344 : vector<16x1xf32>
    %346 = math.rsqrt %345 : vector<16x1xf32>
    %347 = vector.broadcast %346 : vector<16x1xf32> to vector<16x64xf32>
    %348 = arith.mulf %343, %347 : vector<16x64xf32>
    %349 = vector.shape_cast %328 : vector<64xf32> to vector<1x64xf32>
    %350 = vector.broadcast %349 : vector<1x64xf32> to vector<16x64xf32>
    %351 = arith.mulf %348, %350 : vector<16x64xf32>
    %352 = vector.shape_cast %330 : vector<64xf32> to vector<1x64xf32>
    %353 = vector.broadcast %352 : vector<1x64xf32> to vector<16x64xf32>
    %354 = arith.addf %351, %353 : vector<16x64xf32>
    %355 = arith.truncf %354 : vector<16x64xf32> to vector<16x64xbf16>
    %c0_128 = arith.constant 0 : index
    %c0_129 = arith.constant 0 : index
    %356 = vector.load %arg16[%c0_128, %c0_129] : memref<64x128xbf16, #tpu.memory_space<vmem>>, vector<64x128xbf16>
    %cst_130 = arith.constant dense<0.000000e+00> : vector<16x128xf32>
    %357 = tpu.matmul %355, %356, %cst_130 {dimension_numbers = #tpu.dot_dimension_numbers<[1], [0], [0], [1], [0, 0, 1, 1], [], []>} : vector<16x64xbf16>, vector<64x128xbf16>, vector<16x128xf32> -> vector<16x128xf32>
    %c0_131 = arith.constant 0 : index
    %c0_132 = arith.constant 0 : index
    %358 = vector.load %arg17[%c0_131, %c0_132] : memref<1x128xf32, #tpu.memory_space<vmem>>, vector<1x128xf32>
    %359 = vector.shape_cast %358 : vector<1x128xf32> to vector<128xf32>
    %360 = vector.shape_cast %359 : vector<128xf32> to vector<1x128xf32>
    %361 = vector.broadcast %360 : vector<1x128xf32> to vector<16x128xf32>
    %362 = arith.addf %357, %361 : vector<16x128xf32>
    %363 = vector.shape_cast %362 : vector<16x128xf32> to vector<2x8x128xf32>
    %364 = arith.truncf %363 : vector<2x8x128xf32> to vector<2x8x128xbf16>
    %c0_133 = arith.constant 0 : index
    %c0_134 = arith.constant 0 : index
    %c0_135 = arith.constant 0 : index
    %365 = vector.load %arg18[%c0_133, %c0_134, %c0_135] : memref<2x8x128xbf16, #tpu.memory_space<vmem>>, vector<2x8x128xbf16>
    tpu.vector_store %arg18[%c0_133, %c0_134, %c0_135], %364 {strides = array<i32>} : memref<2x8x128xbf16, #tpu.memory_space<vmem>>, vector<2x8x128xbf16>,
    return
  }
  func.func @transform_0(%arg0: i32) -> (i32, i32, i32) {
    %c0_i32 = arith.constant 0 : i32
    %c0_i32_0 = arith.constant 0 : i32
    %c0_i32_1 = arith.constant 0 : i32
    return %arg0, %c0_i32, %c0_i32_0 : i32, i32, i32
  }
  func.func @transform_1(%arg0: i32) -> (i32, i32) {
    %c0_i32 = arith.constant 0 : i32
    %c0_i32_0 = arith.constant 0 : i32
    %c0_i32_1 = arith.constant 0 : i32
    return %c0_i32, %c0_i32_0 : i32, i32
  }
  func.func @transform_2(%arg0: i32) -> (i32, i32) {
    %c0_i32 = arith.constant 0 : i32
    %c0_i32_0 = arith.constant 0 : i32
    %c0_i32_1 = arith.constant 0 : i32
    return %c0_i32, %c0_i32_0 : i32, i32
  }
  func.func @transform_3(%arg0: i32) -> (i32, i32) {
    %c0_i32 = arith.constant 0 : i32
    %c0_i32_0 = arith.constant 0 : i32
    %c0_i32_1 = arith.constant 0 : i32
    return %c0_i32, %c0_i32_0 : i32, i32
  }
  func.func @transform_4(%arg0: i32) -> (i32, i32) {
    %c0_i32 = arith.constant 0 : i32
    %c0_i32_0 = arith.constant 0 : i32
    %c0_i32_1 = arith.constant 0 : i32
    return %c0_i32, %c0_i32_0 : i32, i32
  }
  func.func @transform_5(%arg0: i32) -> (i32, i32) {
    %c0_i32 = arith.constant 0 : i32
    %c0_i32_0 = arith.constant 0 : i32
    %c0_i32_1 = arith.constant 0 : i32
    return %c0_i32, %c0_i32_0 : i32, i32
  }
  func.func @transform_6(%arg0: i32) -> (i32, i32, i32) {
    %c0_i32 = arith.constant 0 : i32
    %c0_i32_0 = arith.constant 0 : i32
    %c0_i32_1 = arith.constant 0 : i32
    %c0_i32_2 = arith.constant 0 : i32
    return %c0_i32, %c0_i32_0, %c0_i32_1 : i32, i32, i32
  }
  func.func @transform_7(%arg0: i32) -> (i32, i32) {
    %c0_i32 = arith.constant 0 : i32
    %c0_i32_0 = arith.constant 0 : i32
    %c0_i32_1 = arith.constant 0 : i32
    return %c0_i32, %c0_i32_0 : i32, i32
  }
  func.func @transform_8(%arg0: i32) -> (i32, i32) {
    %c0_i32 = arith.constant 0 : i32
    %c0_i32_0 = arith.constant 0 : i32
    %c0_i32_1 = arith.constant 0 : i32
    return %c0_i32, %c0_i32_0 : i32, i32
  }
  func.func @transform_9(%arg0: i32) -> (i32, i32, i32) {
    %c0_i32 = arith.constant 0 : i32
    %c0_i32_0 = arith.constant 0 : i32
    %c0_i32_1 = arith.constant 0 : i32
    %c0_i32_2 = arith.constant 0 : i32
    return %c0_i32, %c0_i32_0, %c0_i32_1 : i32, i32, i32
  }
  func.func @transform_10(%arg0: i32) -> (i32, i32) {
    %c0_i32 = arith.constant 0 : i32
    %c0_i32_0 = arith.constant 0 : i32
    %c0_i32_1 = arith.constant 0 : i32
    return %c0_i32, %c0_i32_0 : i32, i32
  }
  func.func @transform_11(%arg0: i32) -> (i32, i32, i32) {
    %c0_i32 = arith.constant 0 : i32
    %c0_i32_0 = arith.constant 0 : i32
    %c0_i32_1 = arith.constant 0 : i32
    %c0_i32_2 = arith.constant 0 : i32
    return %c0_i32, %c0_i32_0, %c0_i32_1 : i32, i32, i32
  }
  func.func @transform_12(%arg0: i32) -> (i32, i32) {
    %c0_i32 = arith.constant 0 : i32
    %c0_i32_0 = arith.constant 0 : i32
    %c0_i32_1 = arith.constant 0 : i32
    return %c0_i32, %c0_i32_0 : i32, i32
  }
  func.func @transform_13(%arg0: i32) -> (i32, i32) {
    %c0_i32 = arith.constant 0 : i32
    %c0_i32_0 = arith.constant 0 : i32
    %c0_i32_1 = arith.constant 0 : i32
    return %c0_i32, %c0_i32_0 : i32, i32
  }
  func.func @transform_14(%arg0: i32) -> (i32, i32) {
    %c0_i32 = arith.constant 0 : i32
    %c0_i32_0 = arith.constant 0 : i32
    %c0_i32_1 = arith.constant 0 : i32
    return %c0_i32, %c0_i32_0 : i32, i32
  }
  func.func @transform_15(%arg0: i32) -> (i32, i32) {
    %c0_i32 = arith.constant 0 : i32
    %c0_i32_0 = arith.constant 0 : i32
    %c0_i32_1 = arith.constant 0 : i32
    return %c0_i32, %c0_i32_0 : i32, i32
  }
  func.func @transform_16(%arg0: i32) -> (i32, i32) {
    %c0_i32 = arith.constant 0 : i32
    %c0_i32_0 = arith.constant 0 : i32
    %c0_i32_1 = arith.constant 0 : i32
    return %c0_i32, %c0_i32_0 : i32, i32
  }
  func.func @transform_17(%arg0: i32) -> (i32, i32, i32) {
    %c0_i32 = arith.constant 0 : i32
    %c0_i32_0 = arith.constant 0 : i32
    %c0_i32_1 = arith.constant 0 : i32
    return %arg0, %c0_i32, %c0_i32_0 : i32, i32, i32
  }
}

</mosaic_0001>

<bundles_post_ra>
// kernel: tile.9
= control target key start
LH: loop header
LB: loop body
LE: loop exit
PB: predicated region body
PF: predicated region fallthrough
CT: control target
= control target key end

     0   :  { %vm36_vm0 = vcmask 1047556   ;;  %s81_s22 = smov 8   ;;  %s82_s23 = smov 16   ;;  %vm38_vm1 = vcmask 64512   ;;  %vm48_vm2 = vcmask 261312   ;;  %vm58_vm3 = vcmask 195712   ;;  %s133_s0 = inlined_call_operand.vmem [shape: f32[8,4,8], index: 0, kind: input, shape index: {}]   ;;  %s134_s1 = inlined_call_operand.vmem [shape: f32[8,32], index: 1, kind: output, shape index: {}]  }
   0x1   :  { %v70_v0 = vld [vmem:[%s133_s0 + $0x1c] sm:$0xf]  ;;  %v71_v1 = vld [vmem:[%s133_s0 + $0x18] sm:$0xf]  ;;  %v72_v2 = vld [vmem:[%s133_s0 + $0x14] sm:$0xf] }
   0x2   :  { %7 = vst [vmem:[#allocation0 + $0x38] sm:$0xf] %v70_v0  ;;  %v73_v3 = vld [vmem:[%s133_s0 + $0x10] sm:$0xf]  ;;  %v74_v4 = vld [vmem:[%s133_s0 + $0xc] sm:$0xf] }
   0x3   :  { %11 = vst [vmem:[#allocation0 + $0x30] sm:$0xf] %v71_v1  ;;  %v75_v5 = vld [vmem:[%s133_s0 + $0x8] sm:$0xf]  ;;  %v76_v6 = vld [vmem:[%s133_s0 + $0x4] sm:$0xf] }
   0x4   :  { %15 = vst [vmem:[#allocation0 + $0x28] sm:$0xf] %v72_v2  ;;  %v32_v7 = vld [vmem:[%s133_s0] sm:$0xf]  ;;  %s80_s0 = smov 24   ;;  %vm68_vm4 = vcmask 130112  }
   0x5   :  { %19 = vst [vmem:[#allocation0 + $0x20] sm:$0xf] %v73_v3 }
   0x6   :  { %23 = vst [vmem:[#allocation0 + $0x18] sm:$0xf] %v74_v4 }
   0x7   :  { %27 = vst [vmem:[#allocation0 + $0x10] sm:$0xf] %v75_v5 }
   0x8   :  { %31 = vst [vmem:[#allocation0 + $0x8] sm:$0xf] %v76_v6 }
   0x9   :  { %33 = vst [vmem:[#allocation0] sm:$0xf] %v32_v7 }
   0xc   :  { %v43_v8 = vld [vmem:[#allocation0 + $0x3] ss:$8 sm:$0xf0]   ;;  %v63_v9 = vld [vmem:[#allocation0 + $0x1] ss:$8 sm:$0xf0]  }
   0xd   :  { %v53_v15 = vld [vmem:[#allocation0 + $0x2] ss:$8 sm:$0xf0]   ;;  %v35_v18 = vld [vmem:[#allocation0] ss:$8 sm:$0xf0]  }
  0x10   :  { %v41_v10 = vld [vmem:[#allocation0 + $0x3] ss:$8 sm:$0xf]   ;;  %v61_v12 = vld [vmem:[#allocation0 + $0x1] ss:$8 sm:$0xf]  }
  0x11   :  { %v45_v11 = vsel %vm36_vm0, %v43_v8, %v41_v10  ;;  %v65_v13 = vsel %vm36_vm0, %v63_v9, %v61_v12  ;;  %v51_v14 = vld [vmem:[#allocation0 + $0x2] ss:$8 sm:$0xf]   ;;  %v34_v17 = vld [vmem:[#allocation0] ss:$8 sm:$0xf]  }
  0x12   :  { %46 = vrot.lane.b32.xlu0 %v45_v11, %s80_s0  ;;  %66 = vrot.lane.b32.xlu1 %v65_v13, %s81_s22  ;;  %v55_v16 = vsel %vm36_vm0, %v53_v15, %v51_v14  ;;  %v37_v19 = vsel %vm36_vm0, %v35_v18, %v34_v17 }
  0x13   :  { %39 = vst.msk [vmem:[%s134_s1] sm:$0xff] %vm38_vm1, %v37_v19  }
  0x1a   :  { %56 = vrot.lane.b32.xlu0 %v55_v16, %s82_s23 }
  0x84   :  { %v47_v20 = vpop.permute.xlu0 %46   ;;  %v67_v21 = vpop.permute.xlu1 %66  }
  0x85   :  { %49 = vst.msk [vmem:[%s134_s1] sm:$0xff] %vm48_vm2, %v47_v20  }
  0x8c   :  { %v57_v22 = vpop.permute.xlu0 %56  }
  0x8d   :  { %59 = vst.msk [vmem:[%s134_s1] sm:$0xff] %vm58_vm3, %v57_v22  }
  0x8e   :  { %69 = vst.msk [vmem:[%s134_s1] sm:$0xff] %vm68_vm4, %v67_v21  }

// kernel: eq.12
= control target key start
LH: loop header
LB: loop body
LE: loop exit
PB: predicated region body
PF: predicated region fallthrough
CT: control target
= control target key end

     0   :  { %s37_s8 = smov 16   ;;  %s38_s9 = smov 32   ;;  %vm7_vm0 = vcmask 130048   ;;  %vm13_vm1 = vcmask 523648   ;;  %vm19_vm2 = vcmask 392448   ;;  %vm25_vm3 = vcmask 261248   ;;  %s55_s0 = inlined_call_operand.vmem [shape: s32[4,16], index: 0, kind: input, shape index: {}]   ;;  %s56_s1 = inlined_call_operand.vmem [shape: s32[64], index: 1, kind: output, shape index: {}]  }
   0x1   :  { %v4_v0 = vld [vmem:[%s55_s0] sm:$0xf]  ;;  %s36_s0 = smov 48  }
   0x2   :  { %5 = vst [vmem:[#allocation1] sm:$0xf] %v4_v0 }
   0x9   :  { %v10_v1 = vld [vmem:[#allocation1 + $0x3] sm:$0x1]   ;;  %v22_v2 = vld [vmem:[#allocation1 + $0x1] sm:$0x1]   ;;  %v16_v3 = vld [vmem:[#allocation1 + $0x2] sm:$0x1]  }
   0xa   :  { %11 = vrot.lane.b32.xlu0 %v10_v1, %s36_s0  ;;  %23 = vrot.lane.b32.xlu1 %v22_v2, %s37_s8  ;;  %v6_v4 = vld [vmem:[#allocation1] sm:$0x1]  }
   0xb   :  { %8 = vst.msk [vmem:[#allocation0] sm:$0x1] %vm7_vm0, %v6_v4  }
  0x12   :  { %17 = vrot.lane.b32.xlu0 %v16_v3, %s38_s9 }
  0x7c   :  { %v12_v5 = vpop.permute.xlu0 %11   ;;  %v24_v6 = vpop.permute.xlu1 %23  }
  0x7d   :  { %14 = vst.msk [vmem:[#allocation0] sm:$0x1] %vm13_vm1, %v12_v5  }
  0x84   :  { %v18_v7 = vpop.permute.xlu0 %17  }
  0x85   :  { %20 = vst.msk [vmem:[#allocation0] sm:$0x1] %vm19_vm2, %v18_v7  }
  0x86   :  { %26 = vst.msk [vmem:[#allocation0] sm:$0x1] %vm25_vm3, %v24_v6  }
  0x8d   :  { %v29_v8 = vld [vmem:[#allocation0] sm:$0x1] }
  0x8e   :  { %32 = vst [vmem:[%s56_s1] sm:$0x1] %v29_v8 }

// kernel: eq.9
= control target key start
LH: loop header
LB: loop body
LE: loop exit
PB: predicated region body
PF: predicated region fallthrough
CT: control target
= control target key end

     0   :  { %s37_s8 = smov 8   ;;  %s38_s9 = smov 16   ;;  %vm7_vm0 = vcmask 64512   ;;  %vm13_vm1 = vcmask 261312   ;;  %vm19_vm2 = vcmask 195712   ;;  %vm25_vm3 = vcmask 130112   ;;  %s55_s0 = inlined_call_operand.vmem [shape: s32[4,8], index: 0, kind: input, shape index: {}]   ;;  %s56_s1 = inlined_call_operand.vmem [shape: s32[32], index: 1, kind: output, shape index: {}]  }
   0x1   :  { %v4_v0 = vld [vmem:[%s55_s0] sm:$0xf]  ;;  %s36_s0 = smov 24  }
   0x2   :  { %5 = vst [vmem:[#allocation1] sm:$0xf] %v4_v0 }
   0x9   :  { %v10_v1 = vld [vmem:[#allocation1 + $0x3] sm:$0x1]   ;;  %v22_v2 = vld [vmem:[#allocation1 + $0x1] sm:$0x1]   ;;  %v16_v3 = vld [vmem:[#allocation1 + $0x2] sm:$0x1]  }
   0xa   :  { %11 = vrot.lane.b32.xlu0 %v10_v1, %s36_s0  ;;  %23 = vrot.lane.b32.xlu1 %v22_v2, %s37_s8  ;;  %v6_v4 = vld [vmem:[#allocation1] sm:$0x1]  }
   0xb   :  { %8 = vst.msk [vmem:[#allocation0] sm:$0x1] %vm7_vm0, %v6_v4  }
  0x12   :  { %17 = vrot.lane.b32.xlu0 %v16_v3, %s38_s9 }
  0x7c   :  { %v12_v5 = vpop.permute.xlu0 %11   ;;  %v24_v6 = vpop.permute.xlu1 %23  }
  0x7d   :  { %14 = vst.msk [vmem:[#allocation0] sm:$0x1] %vm13_vm1, %v12_v5  }
  0x84   :  { %v18_v7 = vpop.permute.xlu0 %17  }
  0x85   :  { %20 = vst.msk [vmem:[#allocation0] sm:$0x1] %vm19_vm2, %v18_v7  }
  0x86   :  { %26 = vst.msk [vmem:[#allocation0] sm:$0x1] %vm25_vm3, %v24_v6  }
  0x8d   :  { %v29_v8 = vld [vmem:[#allocation0] sm:$0x1] }
  0x8e   :  { %32 = vst [vmem:[%s56_s1] sm:$0x1] %v29_v8 }

// kernel: bigram_lm_forward.1
= control target key start
LH: loop header
LB: loop body
LE: loop exit
PB: predicated region body
PF: predicated region fallthrough
CT: control target
= control target key end

     0   :  { %vm70_vm0 = vcmask 523264   ;;  %s2871_s19 = smov 64   ;;  %vm331_vm7 = vcmask 261120   ;;  %s3829_s0 = inlined_call_operand.vmem [shape: f32[2,8,64], index: 0, kind: input, shape index: {}]   ;;  %s3830_s4 = inlined_call_operand.vmem [shape: f32[3,64], index: 4, kind: input, shape index: {}]   ;;  %s3831_s5 = inlined_call_operand.vmem [shape: f32[3,64], index: 5, kind: input, shape index: {}]   ;;  %s3832_s6 = inlined_call_operand.vmem [shape: bf16[3,64,192], index: 6, kind: input, shape index: {}]   ;;  %s3833_s2 = inlined_call_operand.vmem [shape: f32[32,64], index: 2, kind: input, shape index: {}]   ;;  %s3834_s3 = inlined_call_operand.vmem [shape: f32[32,32], index: 3, kind: input, shape index: {}]   ;;  %s3835_s1 = inlined_call_operand.vmem [shape: f32[8,32], index: 1, kind: input, shape index: {}]   ;;  %s3836_s7 = inlined_call_operand.vmem [shape: f32[3,64], index: 7, kind: input, shape index: {}]   ;;  %s3837_s8 = inlined_call_operand.vmem [shape: f32[3,64], index: 8, kind: input, shape index: {}]   ;;  %s3838_s9 = inlined_call_operand.vmem [shape: bf16[3,64,256], index: 9, kind: input, shape index: {}]   ;;  %s3839_s11 = inlined_call_operand.vmem [shape: bf16[3,256,64], index: 11, kind: input, shape index: {}]   ;;  %s3840_s12 = inlined_call_operand.vmem [shape: f32[3,64], index: 12, kind: input, shape index: {}]   ;;  %s3841_s10 = inlined_call_operand.vmem [shape: f32[3,256], index: 10, kind: input, shape index: {}]   ;;  %s3842_s13 = inlined_call_operand.vmem [shape: f32[1,64], index: 13, kind: input, shape index: {}]   ;;  %s3843_s14 = inlined_call_operand.vmem [shape: f32[1,64], index: 14, kind: input, shape index: {}]   ;;  %s3844_s16 = inlined_call_operand.vmem [shape: f32[1,128], index: 16, kind: input, shape index: {}]   ;;  %s3845_s15 = inlined_call_operand.vmem [shape: bf16[64,128], index: 15, kind: input, shape index: {}]   ;;  %s3846_s17 = inlined_call_operand.vmem [shape: bf16[2,8,128], index: 17, kind: output, shape index: {}]  }
   0x1   :  { %3849 = sst [smem:[#allocation2_spill]] %s3829_s0  ;;  %v2183_v8 = vld [vmem:[%s3832_s6 + $0x30] sm:$0xf]  ;;  %v2693_v9 = vld [vmem:[%s3832_s6 + $0x34] sm:$0xf0]  ;;  %v3033_v44 = vld [vmem:[%s3833_s2 + $0x8] sm:$0xff] }
   0x2   :  { %3850 = sst [smem:[#allocation3_spill]] %s3830_s4  ;;  %v2692_v10 = vld [vmem:[%s3832_s6 + $0x34] sm:$0xf]  ;;  %v2184_v11 = vor.u32 %v2693_v9, %v2183_v8  ;;  %v2185_v12 = vld [vmem:[%s3832_s6 + $0x38] sm:$0xf0]  ;;  %v3040_v45 = vld [vmem:[%s3833_s2] sm:$0xff] }
   0x3   :  { %s3851_s26 = sld [smem:[#allocation2_spill]]  ;;  %v2188_v13 = vor.u32 %v2692_v10, %v2185_v12  ;;  %v2175_v14 = vld [vmem:[%s3832_s6 + $0x20] sm:$0xf]  ;;  %v2691_v15 = vld [vmem:[%s3832_s6 + $0x24] sm:$0xf0]  ;;  %v3047_v47 = vld [vmem:[%s3833_s2 + $0x10] sm:$0xff] }
   0x4   :  { %181 = vmatpush.bf16.msra.mxu2 %v2184_v11  ;;  %v2690_v16 = vld [vmem:[%s3832_s6 + $0x24] sm:$0xf]  ;;  %v2176_v17 = vor.u32 %v2691_v15, %v2175_v14  ;;  %v2177_v18 = vld [vmem:[%s3832_s6 + $0x28] sm:$0xf0]  ;;  %v2167_v22 = vld [vmem:[%s3832_s6 + $0x10] sm:$0xf]  ;;  %215 = vrot.lane.b32.xlu2 %v3047_v47, %s2871_s19 }
   0x5   :  { %195 = vmatpush.bf16.msra.mxu1 %v2188_v13  ;;  %v2180_v19 = vor.u32 %v2690_v16, %v2177_v18  ;;  %v2689_v23 = vld [vmem:[%s3832_s6 + $0x14] sm:$0xf0]  ;;  %v2688_v26 = vld [vmem:[%s3832_s6 + $0x14] sm:$0xf]  ;;  %v2169_v27 = vld [vmem:[%s3832_s6 + $0x18] sm:$0xf0] }
   0x6   :  { %v2168_v25 = vor.u32 %v2689_v23, %v2167_v22  ;;  %v2159_v28 = vld [vmem:[%s3832_s6] sm:$0xf]  ;;  %v2172_v31 = vor.u32 %v2688_v26, %v2169_v27  ;;  %v2687_v32 = vld [vmem:[%s3832_s6 + $0x4] sm:$0xf0]  ;;  %v2686_v33 = vld [vmem:[%s3832_s6 + $0x4] sm:$0xf] }
   0x7   :  { %v2160_v34 = vor.u32 %v2687_v32, %v2159_v28  ;;  %v2161_v35 = vld [vmem:[%s3832_s6 + $0x8] sm:$0xf0]  ;;  %v3054_v52 = vld [vmem:[%s3833_s2 + $0x18] sm:$0xff]  ;;  %s3852_s27 = sld [smem:[#allocation3_spill]]  ;;  %v2793_v8 = vld [vmem:[%s3831_s5] ss:$0 sm:$0xff] }
   0x8   :  { %182 = vmatpush.bf16.msra.mxu2 %v2176_v17  ;;  %v2164_v37 = vor.u32 %v2686_v33, %v2161_v35 }
   0x9   :  { %v2965_v0 = vld [vmem:[%s3851_s26] sm:$0xff]  ;;  %v2974_v3 = vld [vmem:[%s3851_s26 + $0x8] sm:$0xff]  ;;  %196 = vmatpush.bf16.msra.mxu1 %v2180_v19 }
   0xa   :  { %v71_v1 = vsel %vm70_vm0, %v2965_v0, 0.0  ;;  %v79_v2 = vmul.f32 %v2965_v0, %v2965_v0  ;;  %v80_v5 = vmul.f32 %v2974_v3, %v2974_v3  ;;  %v74_v6 = vsel %vm70_vm0, %v2974_v3, 0.0 }
   0xb   :  { %72 = vadd.xlane.f32.xlu0 %v71_v1 }
   0xc   :  { %v81_v4 = vsel %vm70_vm0, %v79_v2, 0.0  ;;  %v84_v7 = vsel %vm70_vm0, %v80_v5, 0.0  ;;  %183 = vmatpush.bf16.msra.mxu2 %v2168_v25  ;;  %217 = vrot.lane.b32.xlu2 %v3054_v52, %s2871_s19 }
   0xd   :  { %82 = vadd.xlane.f32.xlu1 %v81_v4  ;;  %197 = vmatpush.bf16.msra.mxu1 %v2172_v31  ;;  %v2792_v1 = vld [vmem:[%s3852_s27] ss:$0 sm:$0xff] }
  0x10   :  { %184 = vmatpush.bf16.msra.mxu2 %v2160_v34 }
  0x11   :  { %198 = vmatpush.bf16.msra.mxu1 %v2164_v37 }
  0x13   :  { %75 = vadd.xlane.f32.xlu0 %v74_v6 }
  0x15   :  { %85 = vadd.xlane.f32.xlu1 %v84_v7 }
  0x27   :  { %211 = vrot.lane.b32.xlu0 %v3040_v45, %s2871_s19 }
  0x2e   :  { %213 = vrot.lane.b32.xlu1 %v3033_v44, %s2871_s19 }
  0x5e   :  { %v3068_v13 = vpop.permute.xlu2 %215 }
  0x66   :  { %v3074_v23 = vpop.permute.xlu2 %217 }
  0x7e   :  { %v73_v20 = vpop.xlane.xlu0 %72 }
  0x7f   :  { %v77_v21 = vmul.f32 0.015625, %v73_v20 }
  0x80   :  { %v83_v24 = vpop.xlane.xlu1 %82 }
  0x81   :  { %v89_v29 = vmul.f32 %v77_v21, %v77_v21  ;;  %v87_v30 = vmul.f32 0.015625, %v83_v24  ;;  %v93_v61 = vsub.f32 %v2965_v0, %v77_v21 }
  0x83   :  { %v91_v36 = vsub.f32 %v87_v30, %v89_v29 }
  0x85   :  { %v95_v38 = vadd.f32 1e-05, %v91_v36 }
  0x86   :  { %v76_v39 = vpop.xlane.xlu0 %75 }
  0x87   :  { %2810 = vrsqrt.f32 %v95_v38  ;;  %v78_v40 = vmul.f32 0.015625, %v76_v39  ;;  %vm103_vm2 = vweird.f32 %v95_v38 }
  0x88   :  { %v86_v41 = vpop.xlane.xlu1 %85 }
  0x89   :  { %v90_v42 = vmul.f32 %v78_v40, %v78_v40  ;;  %v88_v43 = vmul.f32 0.015625, %v86_v41  ;;  %v94_v4 = vsub.f32 %v2974_v3, %v78_v40 }
  0x8b   :  { %v92_v46 = vsub.f32 %v88_v43, %v90_v42 }
  0x8d   :  { %v2811_v48 = vpop.eup %2810  ;;  %v96_v49 = vadd.f32 1e-05, %v92_v46 }
  0x8e   :  { %v98_v50 = vmul.f32 %v2811_v48, %v95_v38  ;;  %vm104_vm1 = vweird.f32 %v2811_v48 }
  0x8f   :  { %2812 = vrsqrt.f32 %v96_v49  ;;  %vm105_vm3 = vmor %vm103_vm2, %vm104_vm1  ;;  %vm113_vm5 = vweird.f32 %v96_v49 }
  0x90   :  { %v99_v51 = vmul.f32 %v2811_v48, %v98_v50 }
  0x92   :  { %v100_v53 = vmul.f32 0.5, %v99_v51 }
  0x94   :  { %v101_v54 = vsub.f32 1.5, %v100_v53 }
  0x95   :  { %v2813_v55 = vpop.eup %2812 }
  0x96   :  { %v102_v56 = vmul.f32 %v2811_v48, %v101_v54  ;;  %v108_v57 = vmul.f32 %v2813_v55, %v96_v49  ;;  %vm114_vm4 = vweird.f32 %v2813_v55 }
  0x97   :  { %vm115_vm6 = vmor %vm113_vm5, %vm114_vm4 }
  0x98   :  { %v109_v58 = vmul.f32 %v2813_v55, %v108_v57  ;;  %v106_v59 = vsel %vm105_vm3, %v2811_v48, %v102_v56 }
  0x99   :  { %v117_v63 = vmul.f32 %v106_v59, %v93_v61  ;;  %v3080_v29 = vpop.permute.xlu0 %211 }
  0x9a   :  { %v110_v60 = vmul.f32 0.5, %v109_v58 }
  0x9b   :  { %v120_v7 = vmul.f32 %v2792_v1, %v117_v63 }
  0x9c   :  { %v111_v62 = vsub.f32 1.5, %v110_v60 }
  0x9d   :  { %v123_v10 = vadd.f32 %v2793_v8, %v120_v7 }
  0x9e   :  { %v112_v2 = vmul.f32 %v2813_v55, %v111_v62 }
  0xa0   :  { %v116_v5 = vsel %vm115_vm6, %v2813_v55, %v112_v2  ;;  %v3078_v28 = vpop.permute.xlu1 %213 }
  0xa1   :  { %v118_v6 = vmul.f32 %v116_v5, %v94_v4 }
  0xa3   :  { %v121_v9 = vmul.f32 %v2792_v1, %v118_v6 }
  0xa5   :  { %v124_v11 = vadd.f32 %v2793_v8, %v121_v9 }
  0xa7   :  { %v125_v12 = vpack.c.bf16 %v124_v11, %v123_v10 }
  0xa9   :  { %2189 = vmatmul.msk.bf16.vlgmr.msra.gmra.mxu2 %vm70_vm0, %v125_v12  ;;  %2190 = vmatmul.msk.bf16.vlgmr.msra.gmra.mxu1 %vm70_vm0, %v125_v12 }
 0x126   :  { %v200_v14 = vpop.f32.mrf.mxu1 }
 0x127   :  { %v241_v15 = vmul.f32 %v200_v14, %v3047_v47  ;;  %v242_v16 = vmul.f32 %v200_v14, %v3054_v52  ;;  %v239_v17 = vmul.f32 %v200_v14, %v3040_v45  ;;  %v240_v18 = vmul.f32 %v200_v14, %v3033_v44 }
 0x129   :  { %v249_v19 = vpack.c.bf16 %v241_v15, %v241_v15  ;;  %v250_v20 = vpack.c.bf16 %v242_v16, %v242_v16  ;;  %v247_v21 = vpack.c.bf16 %v239_v17, %v239_v17  ;;  %v248_v22 = vpack.c.bf16 %v240_v18, %v240_v18 }
 0x12b   :  { %v373_v24 = vunpack.c.l.b16 %v249_v19  ;;  %v374_v25 = vunpack.c.l.b16 %v250_v20  ;;  %v371_v27 = vunpack.c.l.b16 %v247_v21  ;;  %v372_v31 = vunpack.c.l.b16 %v248_v22 }
 0x12c   :  { %v3076_v26 = vpop.f32.mrf.mxu2 }
 0x12d   :  { %v376_v30 = vpack.c.b16 %v374_v25, %v373_v24  ;;  %v225_v32 = vmul.f32 %v3068_v13, %v3076_v26  ;;  %v226_v33 = vmul.f32 %v3074_v23, %v3076_v26  ;;  %v223_v36 = vmul.f32 %v3080_v29, %v3076_v26 }
 0x12e   :  { %v224_v37 = vmul.f32 %v3078_v28, %v3076_v26  ;;  %v375_v38 = vpack.c.b16 %v372_v31, %v371_v27  ;;  %v202_v4 = vpop.f32.mrf.mxu1  ;;  %v205_v25 = vpack.c.bf16 %v3076_v26, %v3076_v26  ;;  %v3119_v26 = vld [vmem:[%s3834_s3 + $0x10] sm:$0xff] }
 0x12f   :  { %388 = vmatpush.bf16.msrb.mxu1 %v376_v30  ;;  %v233_v34 = vpack.c.bf16 %v225_v32, %v225_v32  ;;  %v234_v35 = vpack.c.bf16 %v226_v33, %v226_v33  ;;  %v231_v43 = vpack.c.bf16 %v223_v36, %v223_v36  ;;  %v245_v5 = vmul.f32 %v202_v4, %v3047_v47  ;;  %v3130_v36 = vld [vmem:[%s3834_s3] sm:$0xff] }
 0x130   :  { %v232_v46 = vpack.c.bf16 %v224_v37, %v224_v37  ;;  %v246_v6 = vmul.f32 %v202_v4, %v3054_v52  ;;  %v243_v7 = vmul.f32 %v202_v4, %v3040_v45  ;;  %v244_v9 = vmul.f32 %v202_v4, %v3033_v44  ;;  %v3137_v37 = vld [vmem:[%s3835_s1] sm:$0xff] }
 0x131   :  { %v261_v39 = vunpack.c.l.b16 %v233_v34  ;;  %v262_v40 = vunpack.c.l.b16 %v234_v35  ;;  %v259_v53 = vunpack.c.l.b16 %v231_v43  ;;  %v253_v10 = vpack.c.bf16 %v245_v5, %v245_v5  ;;  %v3113_v34 = vld [vmem:[%s3834_s3 + $0x18] sm:$0xff]  ;;  %v3125_v35 = vld [vmem:[%s3834_s3 + $0x8] sm:$0xff] }
 0x132   :  { %v260_v54 = vunpack.c.l.b16 %v232_v46  ;;  %v254_v11 = vpack.c.bf16 %v246_v6, %v246_v6  ;;  %v251_v14 = vpack.c.bf16 %v243_v7, %v243_v7  ;;  %v252_v15 = vpack.c.bf16 %v244_v9, %v244_v9  ;;  %350 = vmatpush.msra.mxu0 %v3113_v34 }
 0x133   :  { %389 = vmatpush.bf16.msrb.mxu1 %v375_v38  ;;  %v264_v42 = vpack.c.b16 %v262_v40, %v261_v39  ;;  %v401_v16 = vunpack.c.l.b16 %v253_v10 }
 0x134   :  { %v188_v41 = vpop.f32.mrf.mxu2  ;;  %v263_v60 = vpack.c.b16 %v260_v54, %v259_v53  ;;  %v402_v17 = vunpack.c.l.b16 %v254_v11  ;;  %v399_v21 = vunpack.c.l.b16 %v251_v14  ;;  %v400_v22 = vunpack.c.l.b16 %v252_v15  ;;  %351 = vmatpush.msra.mxu0 %v3119_v26  ;;  %v2223_v15 = vld [vmem:[%s3838_s9 + $0x30] sm:$0xf] }
 0x135   :  { %v227_v48 = vmul.f32 %v3080_v29, %v188_v41  ;;  %v228_v49 = vmul.f32 %v3078_v28, %v188_v41  ;;  %267 = vrot.lane.b32.xlu2 %v264_v42, %s2871_s19  ;;  %v229_v55 = vmul.f32 %v3068_v13, %v188_v41  ;;  %v230_v56 = vmul.f32 %v3074_v23, %v188_v41 }
 0x136   :  { %v404_v20 = vpack.c.b16 %v402_v17, %v401_v16  ;;  %v403_v24 = vpack.c.b16 %v400_v22, %v399_v21  ;;  %v206_v33 = vpack.c.bf16 %v188_v41, %v188_v41  ;;  %352 = vmatpush.msra.mxu0 %v3125_v35  ;;  %v2701_v16 = vld [vmem:[%s3838_s9 + $0x34] sm:$0xf0]  ;;  %v2700_v17 = vld [vmem:[%s3838_s9 + $0x34] sm:$0xf]  ;;  %v2215_v22 = vld [vmem:[%s3838_s9 + $0x20] sm:$0xf] }
 0x137   :  { %v235_v50 = vpack.c.bf16 %v227_v48, %v227_v48  ;;  %v236_v51 = vpack.c.bf16 %v228_v49, %v228_v49  ;;  %v237_v61 = vpack.c.bf16 %v229_v55, %v229_v55  ;;  %v238_v62 = vpack.c.bf16 %v230_v56, %v230_v56 }
 0x138   :  { %353 = vmatpush.msra.mxu0 %v3130_v36 }
 0x139   :  { %v295_v57 = vunpack.c.l.b16 %v235_v50  ;;  %v296_v58 = vunpack.c.l.b16 %v236_v51  ;;  %v297_v63 = vunpack.c.l.b16 %v237_v61  ;;  %v298_v1 = vunpack.c.l.b16 %v238_v62 }
 0x13b   :  { %v299_v59 = vpack.c.b16 %v296_v58, %v295_v57  ;;  %v300_v2 = vpack.c.b16 %v298_v1, %v297_v63 }
 0x13d   :  { %301 = vrot.lane.b32.xlu0 %v299_v59, %s2871_s19  ;;  %265 = vrot.lane.b32.xlu2 %v263_v60, %s2871_s19 }
 0x145   :  { %303 = vrot.lane.b32.xlu2 %v300_v2, %s2871_s19 }
 0x18f   :  { %v268_v8 = vpop.permute.xlu2 %267 }
 0x190   :  { %v276_v12 = vsel %vm70_vm0, %v268_v8, 0 }
 0x191   :  { %284 = vmatpush.bf16.xpose.msrb.mxu2 %v276_v12 }
 0x197   :  { %v266_v18 = vpop.permute.xlu2 %265 }
 0x198   :  { %v273_v19 = vsel %vm70_vm0, %v266_v18, 0 }
 0x199   :  { %285 = vmatpush.bf16.xpose.msrb.mxu2 %v273_v19  ;;  %v2224_v19 = vor.u32 %v2701_v16, %v2223_v15 }
 0x19f   :  { %v304_v27 = vpop.permute.xlu2 %303 }
 0x1a0   :  { %2191 = vmatmul.msk.bf16.vlgmr.msrb.gmra.mxu2 %vm70_vm0, %v205_v25  ;;  %v312_v30 = vsel %vm70_vm0, %v304_v27, 0  ;;  %v2698_v25 = vld [vmem:[%s3838_s9 + $0x24] sm:$0xf] }
 0x1a1   :  { %416 = vmatpush.bf16.msra.mxu2 %v404_v20  ;;  %320 = vmatpush.bf16.xpose.msra.mxu3 %v312_v30  ;;  %v2225_v20 = vld [vmem:[%s3838_s9 + $0x38] sm:$0xf0]  ;;  %v2217_v30 = vld [vmem:[%s3838_s9 + $0x28] sm:$0xf0] }
 0x1a2   :  { %v2228_v21 = vor.u32 %v2700_v17, %v2225_v20 }
 0x1a4   :  { %557 = vmatpush.bf16.msrb.mxu0 %v2228_v21  ;;  %v2798_v21 = vld [vmem:[%s3836_s7] ss:$0 sm:$0xff] }
 0x1a5   :  { %417 = vmatpush.bf16.msra.mxu2 %v403_v24  ;;  %v2699_v24 = vld [vmem:[%s3838_s9 + $0x24] sm:$0xf0] }
 0x1a6   :  { %v2216_v27 = vor.u32 %v2699_v24, %v2215_v22 }
 0x1af   :  { %v302_v31 = vpop.permute.xlu0 %301 }
 0x1b0   :  { %v309_v32 = vsel %vm70_vm0, %v302_v31, 0  ;;  %v2220_v31 = vor.u32 %v2698_v25, %v2217_v30  ;;  %v2799_v30 = vld [vmem:[%s3837_s8] ss:$0 sm:$0xff] }
 0x1b1   :  { %321 = vmatpush.bf16.xpose.msra.mxu3 %v309_v32  ;;  %v2207_v32 = vld [vmem:[%s3838_s9 + $0x10] sm:$0xf] }
 0x1b2   :  { %558 = vmatpush.bf16.msrb.mxu0 %v2220_v31 }
 0x1b8   :  { %2192 = vmatmul.msk.bf16.vlgmr.msra.gmra.mxu3 %vm70_vm0, %v206_v33  ;;  %v2697_v33 = vld [vmem:[%s3838_s9 + $0x14] sm:$0xf0] }
 0x1b9   :  { %543 = vmatpush.bf16.msrb.mxu3 %v2224_v19 }
 0x1bd   :  { %544 = vmatpush.bf16.msrb.mxu3 %v2216_v27 }
 0x223   :  { %v287_v38 = vpop.f32.mrf.mxu2 }
 0x224   :  { %v288_v39 = vadd.f32 %v287_v38, %v3137_v37  ;;  %v2696_v38 = vld [vmem:[%s3838_s9 + $0x14] sm:$0xf] }
 0x226   :  { %v327_v40 = vmul.f32 1.442695, %v288_v39  ;;  %v2208_v39 = vor.u32 %v2697_v33, %v2207_v32 }
 0x228   :  { %2814 = vpow2.f32 %v327_v40  ;;  %v2209_v40 = vld [vmem:[%s3838_s9 + $0x18] sm:$0xf0]  ;;  %545 = vmatpush.bf16.msrb.mxu3 %v2208_v39  ;;  %v2706_v39 = vld [vmem:[%s3839_s11 + $0x20] sm:$0xff] }
 0x22b   :  { %v289_v41 = vpop.f32.mrf.mxu2 }
 0x22c   :  { %v2199_v41 = vld [vmem:[%s3838_s9] sm:$0xf] }
 0x22e   :  { %v2815_v42 = vpop.eup %2814 }
 0x22f   :  { %2193 = vmatmul.msk.f32.vlgmr.msra.gmra.mxu0 %vm331_vm7, %v2815_v42 }
 0x23b   :  { %v323_v43 = vpop.f32.mrf.mxu3 }
 0x23c   :  { %v324_v46 = vadd.f32 %v323_v43, %v3137_v37  ;;  %v2212_v43 = vor.u32 %v2696_v38, %v2209_v40  ;;  %v2713_v38 = vld [vmem:[%s3839_s11 + $0x58] sm:$0xff]  ;;  %v2712_v40 = vld [vmem:[%s3839_s11 + $0x50] sm:$0xff] }
 0x23e   :  { %v329_v48 = vmul.f32 1.442695, %v324_v46  ;;  %v2694_v46 = vld [vmem:[%s3838_s9 + $0x4] sm:$0xf]  ;;  %559 = vmatpush.bf16.msrb.mxu0 %v2212_v43  ;;  %v2704_v43 = vld [vmem:[%s3839_s11 + $0x10] sm:$0xff] }
 0x240   :  { %2816 = vpow2.f32 %v329_v48  ;;  %v2201_v48 = vld [vmem:[%s3838_s9 + $0x8] sm:$0xf0] }
 0x243   :  { %v325_v49 = vpop.f32.mrf.mxu3 }
 0x246   :  { %v2817_v50 = vpop.eup %2816 }
 0x247   :  { %2194 = vmatmul.msk.f32.gmra.mxu0 %vm331_vm7, %v2817_v50 }
 0x2ac   :  { %v355_v51 = vpop.f32.mrf.mxu0 }
 0x2ad   :  { %2818 = vrcp.f32 %v355_v51  ;;  %v2204_v51 = vor.u32 %v2694_v46, %v2201_v48  ;;  %v2710_v46 = vld [vmem:[%s3839_s11 + $0x40] sm:$0xff]  ;;  %v2703_v48 = vld [vmem:[%s3839_s11 + $0x8] sm:$0xff] }
 0x2af   :  { %560 = vmatpush.bf16.msrb.mxu0 %v2204_v51 }
 0x2b3   :  { %v2819_v53 = vpop.eup %2818 }
 0x2b4   :  { %v363_v54 = vmul.f32 %v2819_v53, %v2815_v42  ;;  %v2695_v42 = vld [vmem:[%s3838_s9 + $0x4] sm:$0xf0] }
 0x2b6   :  { %v365_v55 = vpack.c.bf16 %v363_v54, %v363_v54 }
 0x2b8   :  { %2195 = vmatmul.msk.bf16.vlgmr.msrb.gmra.mxu1 %vm331_vm7, %v365_v55 }
 0x2c4   :  { %v358_v56 = vpop.f32.mrf.mxu0 }
 0x2c5   :  { %2820 = vrcp.f32 %v358_v56 }
 0x2cb   :  { %v2821_v57 = vpop.eup %2820 }
 0x2cc   :  { %v364_v58 = vmul.f32 %v2821_v57, %v2817_v50  ;;  %v2200_v50 = vor.u32 %v2695_v42, %v2199_v41  ;;  %v2705_v41 = vld [vmem:[%s3839_s11 + $0x18] sm:$0xff]  ;;  %v2711_v42 = vld [vmem:[%s3839_s11 + $0x48] sm:$0xff] }
 0x2ce   :  { %v366_v59 = vpack.c.bf16 %v364_v58, %v364_v58  ;;  %546 = vmatpush.bf16.msrb.mxu3 %v2200_v50  ;;  %v490_v50 = vld [vmem:[%s3841_s10] ss:$4 sm:$0x3] }
 0x2d0   :  { %2196 = vmatmul.msk.bf16.vlgmr.msra.gmra.mxu2 %vm331_vm7, %v366_v59  ;;  %v2717_v59 = vld [vmem:[%s3839_s11 + $0x78] sm:$0xff] }
 0x2d1   :  { %717 = vmatpush.bf16.msrb.mxu2 %v2717_v59 }
 0x335   :  { %v391_v60 = vpop.f32.mrf.mxu1 }
 0x336   :  { %v3146_v61 = vadd.f32 %v391_v60, %v2965_v0  ;;  %v2709_v60 = vld [vmem:[%s3839_s11 + $0x38] sm:$0xff] }
 0x337   :  { %703 = vmatpush.bf16.msra.mxu1 %v2709_v60 }
 0x338   :  { %v427_v62 = vsel %vm70_vm0, %v3146_v61, 0.0  ;;  %v435_v63 = vmul.f32 %v3146_v61, %v3146_v61 }
 0x339   :  { %428 = vadd.xlane.f32.xlu2 %v427_v62 }
 0x33a   :  { %v437_v1 = vsel %vm70_vm0, %v435_v63, 0.0 }
 0x33b   :  { %438 = vadd.xlane.f32.xlu0 %v437_v1  ;;  %v2716_v1 = vld [vmem:[%s3839_s11 + $0x70] sm:$0xff] }
 0x33c   :  { %718 = vmatpush.bf16.msrb.mxu2 %v2716_v1 }
 0x33d   :  { %v393_v2 = vpop.f32.mrf.mxu1 }
 0x33e   :  { %v2708_v2 = vld [vmem:[%s3839_s11 + $0x30] sm:$0xff] }
 0x33f   :  { %704 = vmatpush.bf16.msra.mxu1 %v2708_v2  ;;  %v2800_v2 = vld [vmem:[%s3840_s12] ss:$0 sm:$0xff] }
 0x353   :  { %v419_v4 = vpop.f32.mrf.mxu2 }
 0x354   :  { %v3154_v5 = vadd.f32 %v419_v4, %v2974_v3 }
 0x356   :  { %v430_v6 = vsel %vm70_vm0, %v3154_v5, 0.0  ;;  %v436_v0 = vmul.f32 %v3154_v5, %v3154_v5 }
 0x357   :  { %431 = vadd.xlane.f32.xlu1 %v430_v6 }
 0x358   :  { %v440_v7 = vsel %vm70_vm0, %v436_v0, 0.0  ;;  %v2715_v0 = vld [vmem:[%s3839_s11 + $0x68] sm:$0xff] }
 0x359   :  { %441 = vadd.xlane.f32.xlu2 %v440_v7  ;;  %v2707_v7 = vld [vmem:[%s3839_s11 + $0x28] sm:$0xff]  ;;  %719 = vmatpush.bf16.msrb.mxu2 %v2715_v0 }
 0x35a   :  { %705 = vmatpush.bf16.msra.mxu1 %v2707_v7 }
 0x35b   :  { %v421_v8 = vpop.f32.mrf.mxu2 }
 0x35e   :  { %706 = vmatpush.bf16.msra.mxu1 %v2706_v39 }
 0x362   :  { %707 = vmatpush.bf16.msra.mxu1 %v2705_v41  ;;  %v2313_v41 = vld [vmem:[%s3832_s6 + $0x50] sm:$0xf] }
 0x366   :  { %708 = vmatpush.bf16.msra.mxu1 %v2704_v43  ;;  %v2720_v43 = vld [vmem:[%s3832_s6 + $0x54] sm:$0xf] }
 0x36a   :  { %709 = vmatpush.bf16.msra.mxu1 %v2703_v48 }
 0x3ac   :  { %v429_v9 = vpop.xlane.xlu2 %428 }
 0x3ad   :  { %v3161_v10 = vmul.f32 0.015625, %v429_v9  ;;  %v2714_v9 = vld [vmem:[%s3839_s11 + $0x60] sm:$0xff] }
 0x3ae   :  { %v439_v11 = vpop.xlane.xlu0 %438  ;;  %720 = vmatpush.bf16.msrb.mxu2 %v2714_v9 }
 0x3af   :  { %v445_v12 = vmul.f32 %v3161_v10, %v3161_v10  ;;  %v443_v3 = vmul.f32 0.015625, %v439_v11  ;;  %v449_v17 = vsub.f32 %v3146_v61, %v3161_v10 }
 0x3b1   :  { %v447_v14 = vsub.f32 %v443_v3, %v445_v12 }
 0x3b2   :  { %721 = vmatpush.bf16.msrb.mxu2 %v2713_v38 }
 0x3b3   :  { %v3174_v18 = vadd.f32 1e-05, %v447_v14 }
 0x3b5   :  { %2822 = vrsqrt.f32 %v3174_v18  ;;  %vm459_vm9 = vweird.f32 %v3174_v18 }
 0x3b6   :  { %722 = vmatpush.bf16.msrb.mxu2 %v2712_v40 }
 0x3ba   :  { %723 = vmatpush.bf16.msrb.mxu2 %v2711_v42  ;;  %v2721_v42 = vld [vmem:[%s3832_s6 + $0x54] sm:$0xf0] }
 0x3bb   :  { %v2823_v49 = vpop.eup %2822 }
 0x3bc   :  { %v454_v53 = vmul.f32 %v2823_v49, %v3174_v18  ;;  %vm460_vm8 = vweird.f32 %v2823_v49 }
 0x3bd   :  { %vm461_vm10 = vmor %vm459_vm9, %vm460_vm8 }
 0x3be   :  { %v455_v62 = vmul.f32 %v2823_v49, %v454_v53  ;;  %724 = vmatpush.bf16.msrb.mxu2 %v2710_v46  ;;  %v493_v53 = vperm.slane %v490_v50, 1 }
 0x3c0   :  { %v456_v6 = vmul.f32 0.5, %v455_v62 }
 0x3c2   :  { %v457_v8 = vsub.f32 1.5, %v456_v6 }
 0x3c4   :  { %v458_v12 = vmul.f32 %v2823_v49, %v457_v8 }
 0x3c6   :  { %v462_v15 = vsel %vm461_vm10, %v2823_v49, %v458_v12  ;;  %v2702_v49 = vld [vmem:[%s3839_s11] sm:$0xff] }
 0x3c7   :  { %v473_v20 = vmul.f32 %v462_v15, %v449_v17  ;;  %710 = vmatpush.bf16.msra.mxu1 %v2702_v49  ;;  %v2314_v49 = vor.u32 %v2721_v42, %v2313_v41 }
 0x3c9   :  { %v476_v27 = vmul.f32 %v2798_v21, %v473_v20 }
 0x3ca   :  { %v432_v54 = vpop.xlane.xlu1 %431 }
 0x3cb   :  { %v434_v55 = vmul.f32 0.015625, %v432_v54  ;;  %v479_v31 = vadd.f32 %v2799_v30, %v476_v27  ;;  %998 = vmatpush.msrb.mxu1 %v3113_v34  ;;  %v2321_v27 = vld [vmem:[%s3832_s6 + $0x60] sm:$0xf] }
 0x3cc   :  { %v442_v56 = vpop.xlane.xlu2 %441 }
 0x3cd   :  { %v446_v57 = vmul.f32 %v434_v55, %v434_v55  ;;  %v444_v58 = vmul.f32 0.015625, %v442_v56  ;;  %v450_v24 = vsub.f32 %v3154_v5, %v434_v55  ;;  %999 = vmatpush.msrb.mxu1 %v3119_v26 }
 0x3cf   :  { %v448_v63 = vsub.f32 %v444_v58, %v446_v57  ;;  %1000 = vmatpush.msrb.mxu1 %v3125_v35  ;;  %v492_v57 = vperm.slane %v490_v50, 0  ;;  %v2315_v50 = vld [vmem:[%s3832_s6 + $0x58] sm:$0xf0] }
 0x3d1   :  { %v452_v4 = vadd.f32 1e-05, %v448_v63  ;;  %1001 = vmatpush.msrb.mxu1 %v3130_v36 }
 0x3d3   :  { %2824 = vrsqrt.f32 %v452_v4  ;;  %vm469_vm12 = vweird.f32 %v452_v4 }
 0x3d9   :  { %v2825_v11 = vpop.eup %2824 }
 0x3da   :  { %v464_v3 = vmul.f32 %v2825_v11, %v452_v4  ;;  %vm470_vm11 = vweird.f32 %v2825_v11 }
 0x3db   :  { %vm471_vm13 = vmor %vm469_vm12, %vm470_vm11 }
 0x3dc   :  { %v465_v14 = vmul.f32 %v2825_v11, %v464_v3 }
 0x3de   :  { %v466_v16 = vmul.f32 0.5, %v465_v14 }
 0x3e0   :  { %v467_v19 = vsub.f32 1.5, %v466_v16 }
 0x3e2   :  { %v468_v22 = vmul.f32 %v2825_v11, %v467_v19 }
 0x3e4   :  { %v472_v18 = vsel %vm471_vm13, %v2825_v11, %v468_v22  ;;  %v2725_v22 = vld [vmem:[%s3832_s6 + $0x74] sm:$0xf0] }
 0x3e5   :  { %v474_v25 = vmul.f32 %v472_v18, %v450_v24  ;;  %v2331_v18 = vld [vmem:[%s3832_s6 + $0x78] sm:$0xf0] }
 0x3e7   :  { %v477_v10 = vmul.f32 %v2798_v21, %v474_v25  ;;  %v2329_v21 = vld [vmem:[%s3832_s6 + $0x70] sm:$0xf] }
 0x3e8   :  { %v2330_v24 = vor.u32 %v2725_v22, %v2329_v21 }
 0x3e9   :  { %v480_v32 = vadd.f32 %v2799_v30, %v477_v10  ;;  %v2723_v30 = vld [vmem:[%s3832_s6 + $0x64] sm:$0xf0]  ;;  %v2722_v10 = vld [vmem:[%s3832_s6 + $0x64] sm:$0xf] }
 0x3ea   :  { %846 = vmatpush.bf16.msra.mxu3 %v2330_v24  ;;  %v2795_v24 = vld [vmem:[%s3831_s5 + $0x1] ss:$0 sm:$0xff] }
 0x3eb   :  { %v481_v33 = vpack.c.bf16 %v480_v32, %v479_v31  ;;  %v2322_v31 = vor.u32 %v2723_v30, %v2321_v27  ;;  %v2323_v32 = vld [vmem:[%s3832_s6 + $0x68] sm:$0xf0] }
 0x3ec   :  { %v2326_v38 = vor.u32 %v2722_v10, %v2323_v32 }
 0x3ed   :  { %2229 = vmatmul.msk.bf16.vlgmr.msrb.gmra.mxu3 %vm70_vm0, %v481_v33  ;;  %2230 = vmatmul.msk.bf16.vlgmr.msrb.gmra.mxu0 %vm70_vm0, %v481_v33 }
 0x3ee   :  { %847 = vmatpush.bf16.msra.mxu3 %v2322_v31 }
 0x3f2   :  { %848 = vmatpush.bf16.msra.mxu3 %v2314_v49 }
 0x46a   :  { %v562_v51 = vpop.f32.mrf.mxu0 }
 0x46b   :  { %v563_v55 = vadd.f32 %v562_v51, %v493_v53  ;;  %v2318_v51 = vor.u32 %v2720_v43, %v2315_v50 }
 0x46d   :  { %v568_v59 = vmax.f32 %v563_v55, 0.0  ;;  %v2719_v55 = vld [vmem:[%s3832_s6 + $0x44] sm:$0xf0] }
 0x470   :  { %v548_v54 = vpop.f32.mrf.mxu3 }
 0x471   :  { %v549_v34 = vadd.f32 %v548_v54, %v492_v57  ;;  %v2305_v54 = vld [vmem:[%s3832_s6 + $0x40] sm:$0xf] }
 0x472   :  { %v564_v56 = vpop.f32.mrf.mxu0 }
 0x473   :  { %v565_v58 = vadd.f32 %v564_v56, %v493_v53  ;;  %v567_v35 = vmax.f32 %v549_v34, 0.0  ;;  %v2718_v56 = vld [vmem:[%s3832_s6 + $0x44] sm:$0xf] }
 0x475   :  { %v570_v60 = vmax.f32 %v565_v58, 0.0  ;;  %v2307_v58 = vld [vmem:[%s3832_s6 + $0x48] sm:$0xf0] }
 0x477   :  { %v572_v62 = vpack.c.bf16 %v570_v60, %v568_v59  ;;  %v2310_v60 = vor.u32 %v2718_v56, %v2307_v58 }
 0x478   :  { %v550_v26 = vpop.f32.mrf.mxu3 }
 0x479   :  { %v551_v63 = vadd.f32 %v550_v26, %v492_v57  ;;  %725 = vmatmul.bf16.vlgmr.msrb.gmra.mxu2 %v572_v62  ;;  %v2306_v57 = vor.u32 %v2719_v55, %v2305_v54 }
 0x47b   :  { %v569_v36 = vmax.f32 %v551_v63, 0.0  ;;  %849 = vmatpush.bf16.msra.mxu3 %v2306_v57 }
 0x47d   :  { %v571_v1 = vpack.c.bf16 %v569_v36, %v567_v35 }
 0x47f   :  { %711 = vmatmul.bf16.vlgmr.msra.gmra.mxu1 %v571_v1 }
 0x4fc   :  { %v712_v4 = vpop.f32.mrf.mxu1  ;;  %v726_v6 = vpop.f32.mrf.mxu2 }
 0x4fd   :  { %v713_v0 = vadd.f32 %v2800_v2, %v712_v4 }
 0x4ff   :  { %v727_v7 = vadd.f32 %v726_v6, %v713_v0 }
 0x501   :  { %v3288_v8 = vadd.f32 %v727_v7, %v3146_v61 }
 0x503   :  { %v735_v9 = vsel %vm70_vm0, %v3288_v8, 0.0  ;;  %v743_v11 = vmul.f32 %v3288_v8, %v3288_v8 }
 0x504   :  { %v714_v12 = vpop.f32.mrf.mxu1  ;;  %736 = vadd.xlane.f32.xlu1 %v735_v9  ;;  %v728_v15 = vpop.f32.mrf.mxu2 }
 0x505   :  { %v715_v3 = vadd.f32 %v2800_v2, %v714_v12  ;;  %v745_v14 = vsel %vm70_vm0, %v743_v11, 0.0 }
 0x506   :  { %746 = vadd.xlane.f32.xlu2 %v745_v14 }
 0x507   :  { %v729_v16 = vadd.f32 %v728_v15, %v715_v3 }
 0x509   :  { %v3296_v17 = vadd.f32 %v729_v16, %v3154_v5  ;;  %v2724_v5 = vld [vmem:[%s3832_s6 + $0x74] sm:$0xf] }
 0x50a   :  { %v2334_v25 = vor.u32 %v2724_v5, %v2331_v18 }
 0x50b   :  { %v738_v61 = vsel %vm70_vm0, %v3296_v17, 0.0  ;;  %v744_v19 = vmul.f32 %v3296_v17, %v3296_v17 }
 0x50c   :  { %739 = vadd.xlane.f32.xlu0 %v738_v61  ;;  %860 = vmatpush.bf16.msra.mxu0 %v2334_v25 }
 0x50d   :  { %v748_v20 = vsel %vm70_vm0, %v744_v19, 0.0  ;;  %v2794_v19 = vld [vmem:[%s3852_s27 + $0x1] ss:$0 sm:$0xff] }
 0x50e   :  { %749 = vadd.xlane.f32.xlu1 %v748_v20 }
 0x510   :  { %861 = vmatpush.bf16.msra.mxu0 %v2326_v38 }
 0x514   :  { %862 = vmatpush.bf16.msra.mxu0 %v2318_v51 }
 0x518   :  { %863 = vmatpush.bf16.msra.mxu0 %v2310_v60 }
 0x577   :  { %v737_v33 = vpop.xlane.xlu1 %736 }
 0x578   :  { %v741_v39 = vmul.f32 0.015625, %v737_v33 }
 0x579   :  { %v747_v40 = vpop.xlane.xlu2 %746 }
 0x57a   :  { %v753_v46 = vmul.f32 %v741_v39, %v741_v39  ;;  %v751_v48 = vmul.f32 0.015625, %v747_v40  ;;  %v757_v16 = vsub.f32 %v3288_v8, %v741_v39 }
 0x57c   :  { %v755_v53 = vsub.f32 %v751_v48, %v753_v46 }
 0x57e   :  { %v759_v59 = vadd.f32 1e-05, %v755_v53 }
 0x57f   :  { %v740_v34 = vpop.xlane.xlu0 %739 }
 0x580   :  { %2826 = vrsqrt.f32 %v759_v59  ;;  %v742_v62 = vmul.f32 0.015625, %v740_v34  ;;  %vm767_vm15 = vweird.f32 %v759_v59 }
 0x581   :  { %v750_v26 = vpop.xlane.xlu1 %749 }
 0x582   :  { %v754_v63 = vmul.f32 %v742_v62, %v742_v62  ;;  %v752_v35 = vmul.f32 0.015625, %v750_v26  ;;  %v758_v22 = vsub.f32 %v3296_v17, %v742_v62 }
 0x584   :  { %v756_v36 = vsub.f32 %v752_v35, %v754_v63 }
 0x586   :  { %v2827_v1 = vpop.eup %2826  ;;  %v760_v2 = vadd.f32 1e-05, %v756_v36 }
 0x587   :  { %v762_v4 = vmul.f32 %v2827_v1, %v759_v59  ;;  %vm768_vm14 = vweird.f32 %v2827_v1 }
 0x588   :  { %2828 = vrsqrt.f32 %v760_v2  ;;  %vm769_vm1 = vmor %vm767_vm15, %vm768_vm14  ;;  %vm777_vm3 = vweird.f32 %v760_v2 }
 0x589   :  { %v763_v6 = vmul.f32 %v2827_v1, %v762_v4 }
 0x58b   :  { %v764_v0 = vmul.f32 0.5, %v763_v6 }
 0x58d   :  { %v765_v7 = vsub.f32 1.5, %v764_v0 }
 0x58e   :  { %v2829_v9 = vpop.eup %2828 }
 0x58f   :  { %v766_v11 = vmul.f32 %v2827_v1, %v765_v7  ;;  %v772_v12 = vmul.f32 %v2829_v9, %v760_v2  ;;  %vm778_vm2 = vweird.f32 %v2829_v9 }
 0x590   :  { %vm779_vm4 = vmor %vm777_vm3, %vm778_vm2 }
 0x591   :  { %v773_v3 = vmul.f32 %v2829_v9, %v772_v12  ;;  %v770_v14 = vsel %vm769_vm1, %v2827_v1, %v766_v11 }
 0x592   :  { %v781_v20 = vmul.f32 %v770_v14, %v757_v16 }
 0x593   :  { %v774_v15 = vmul.f32 0.5, %v773_v3 }
 0x594   :  { %v784_v18 = vmul.f32 %v2794_v19, %v781_v20 }
 0x595   :  { %v775_v61 = vsub.f32 1.5, %v774_v15 }
 0x596   :  { %v787_v30 = vadd.f32 %v2795_v24, %v784_v18 }
 0x597   :  { %v776_v21 = vmul.f32 %v2829_v9, %v775_v61 }
 0x599   :  { %v780_v5 = vsel %vm779_vm4, %v2829_v9, %v776_v21 }
 0x59a   :  { %v782_v25 = vmul.f32 %v780_v5, %v758_v22 }
 0x59c   :  { %v785_v27 = vmul.f32 %v2794_v19, %v782_v25 }
 0x59e   :  { %v788_v10 = vadd.f32 %v2795_v24, %v785_v27 }
 0x5a0   :  { %v789_v31 = vpack.c.bf16 %v788_v10, %v787_v30 }
 0x5a2   :  { %2335 = vmatmul.msk.bf16.vlgmr.msra.gmra.mxu3 %vm70_vm0, %v789_v31  ;;  %2336 = vmatmul.msk.bf16.vlgmr.msra.gmra.mxu0 %vm70_vm0, %v789_v31 }
 0x61f   :  { %v865_v32 = vpop.f32.mrf.mxu0 }
 0x620   :  { %v888_v33 = vmul.f32 %v865_v32, %v3040_v45  ;;  %v889_v38 = vmul.f32 %v865_v32, %v3033_v44  ;;  %v890_v39 = vmul.f32 %v865_v32, %v3047_v47  ;;  %v891_v40 = vmul.f32 %v865_v32, %v3054_v52 }
 0x622   :  { %v896_v41 = vpack.c.bf16 %v888_v33, %v888_v33  ;;  %v897_v42 = vpack.c.bf16 %v889_v38, %v889_v38  ;;  %v898_v43 = vpack.c.bf16 %v890_v39, %v890_v39  ;;  %v899_v46 = vpack.c.bf16 %v891_v40, %v891_v40 }
 0x624   :  { %v1021_v48 = vunpack.c.l.b16 %v898_v43  ;;  %v1022_v49 = vunpack.c.l.b16 %v899_v46  ;;  %v1019_v53 = vunpack.c.l.b16 %v896_v41  ;;  %v1020_v54 = vunpack.c.l.b16 %v897_v42 }
 0x625   :  { %v3365_v50 = vpop.f32.mrf.mxu3 }
 0x626   :  { %v1024_v51 = vpack.c.b16 %v1022_v49, %v1021_v48  ;;  %v874_v55 = vmul.f32 %v3365_v50, %v3068_v13  ;;  %v875_v56 = vmul.f32 %v3365_v50, %v3074_v23  ;;  %v872_v57 = vmul.f32 %v3365_v50, %v3080_v29 }
 0x627   :  { %v873_v58 = vmul.f32 %v3365_v50, %v3078_v28  ;;  %v1023_v26 = vpack.c.b16 %v1020_v54, %v1019_v53  ;;  %v867_v5 = vpop.f32.mrf.mxu0  ;;  %v870_v49 = vpack.c.bf16 %v3365_v50, %v3365_v50 }
 0x628   :  { %1036 = vmatpush.bf16.msra.mxu2 %v1024_v51  ;;  %v882_v59 = vpack.c.bf16 %v874_v55, %v874_v55  ;;  %v883_v60 = vpack.c.bf16 %v875_v56, %v875_v56  ;;  %v880_v34 = vpack.c.bf16 %v872_v57, %v872_v57  ;;  %v894_v24 = vmul.f32 %v867_v5, %v3047_v47 }
 0x629   :  { %v881_v62 = vpack.c.bf16 %v873_v58, %v873_v58  ;;  %v895_v18 = vmul.f32 %v867_v5, %v3054_v52  ;;  %v892_v25 = vmul.f32 %v867_v5, %v3040_v45  ;;  %v893_v30 = vmul.f32 %v867_v5, %v3033_v44 }
 0x62a   :  { %v910_v63 = vunpack.c.l.b16 %v882_v59  ;;  %v911_v35 = vunpack.c.l.b16 %v883_v60  ;;  %v908_v36 = vunpack.c.l.b16 %v880_v34  ;;  %v902_v10 = vpack.c.bf16 %v894_v24, %v894_v24  ;;  %v2370_v24 = vld [vmem:[%s3838_s9 + $0x60] sm:$0xf] }
 0x62b   :  { %v909_v1 = vunpack.c.l.b16 %v881_v62  ;;  %v903_v31 = vpack.c.bf16 %v895_v18, %v895_v18  ;;  %v900_v33 = vpack.c.bf16 %v892_v25, %v892_v25  ;;  %v901_v38 = vpack.c.bf16 %v893_v30, %v893_v30  ;;  %v2731_v18 = vld [vmem:[%s3838_s9 + $0x64] sm:$0xf0]  ;;  %v2730_v25 = vld [vmem:[%s3838_s9 + $0x64] sm:$0xf]  ;;  %v2372_v30 = vld [vmem:[%s3838_s9 + $0x68] sm:$0xf0] }
 0x62c   :  { %1037 = vmatpush.bf16.msra.mxu2 %v1023_v26  ;;  %v913_v4 = vpack.c.b16 %v911_v35, %v910_v63  ;;  %v1049_v39 = vunpack.c.l.b16 %v902_v10  ;;  %v2375_v10 = vor.u32 %v2730_v25, %v2372_v30  ;;  %v2802_v25 = vld [vmem:[%s3837_s8 + $0x1] ss:$0 sm:$0xff] }
 0x62d   :  { %v853_v2 = vpop.f32.mrf.mxu3  ;;  %v912_v6 = vpack.c.b16 %v909_v1, %v908_v36  ;;  %v1050_v40 = vunpack.c.l.b16 %v903_v31  ;;  %v1047_v43 = vunpack.c.l.b16 %v900_v33  ;;  %v1048_v46 = vunpack.c.l.b16 %v901_v38  ;;  %v2362_v33 = vld [vmem:[%s3838_s9 + $0x50] sm:$0xf]  ;;  %v2729_v38 = vld [vmem:[%s3838_s9 + $0x54] sm:$0xf0] }
 0x62e   :  { %v878_v0 = vmul.f32 %v853_v2, %v3068_v13  ;;  %v879_v7 = vmul.f32 %v853_v2, %v3074_v23  ;;  %v876_v9 = vmul.f32 %v853_v2, %v3080_v29  ;;  %916 = vrot.lane.b32.xlu0 %v913_v4, %s2871_s19  ;;  %v877_v11 = vmul.f32 %v853_v2, %v3078_v28 }
 0x62f   :  { %914 = vrot.lane.b32.xlu2 %v912_v6, %s2871_s19  ;;  %v1052_v45 = vpack.c.b16 %v1050_v40, %v1049_v39  ;;  %v1051_v48 = vpack.c.b16 %v1048_v46, %v1047_v43  ;;  %v871_v53 = vpack.c.bf16 %v853_v2, %v853_v2  ;;  %v2363_v40 = vor.u32 %v2729_v38, %v2362_v33  ;;  %v2354_v46 = vld [vmem:[%s3838_s9 + $0x40] sm:$0xf]  ;;  %v2745_v33 = vld [vmem:[%s3839_s11 + $0xd8] sm:$0xff]  ;;  %v2736_v38 = vld [vmem:[%s3839_s11 + $0x90] sm:$0xff] }
 0x630   :  { %v886_v12 = vpack.c.bf16 %v878_v0, %v878_v0  ;;  %v887_v3 = vpack.c.bf16 %v879_v7, %v879_v7  ;;  %v884_v14 = vpack.c.bf16 %v876_v9, %v876_v9  ;;  %v885_v15 = vpack.c.bf16 %v877_v11, %v877_v11 }
 0x632   :  { %v946_v16 = vunpack.c.l.b16 %v886_v12  ;;  %v947_v61 = vunpack.c.l.b16 %v887_v3  ;;  %v944_v19 = vunpack.c.l.b16 %v884_v14  ;;  %v945_v20 = vunpack.c.l.b16 %v885_v15 }
 0x634   :  { %v949_v21 = vpack.c.b16 %v947_v61, %v946_v16  ;;  %v948_v22 = vpack.c.b16 %v945_v20, %v944_v19  ;;  %v2378_v19 = vld [vmem:[%s3838_s9 + $0x70] sm:$0xf]  ;;  %v2732_v20 = vld [vmem:[%s3838_s9 + $0x74] sm:$0xf] }
 0x636   :  { %952 = vrot.lane.b32.xlu1 %v949_v21, %s2871_s19  ;;  %950 = vrot.lane.b32.xlu0 %v948_v22, %s2871_s19  ;;  %v2380_v22 = vld [vmem:[%s3838_s9 + $0x78] sm:$0xf0] }
 0x637   :  { %v2383_v5 = vor.u32 %v2732_v20, %v2380_v22 }
 0x639   :  { %1207 = vmatpush.bf16.msra.mxu1 %v2383_v5 }
 0x63d   :  { %1208 = vmatpush.bf16.msra.mxu1 %v2375_v10 }
 0x689   :  { %v915_v41 = vpop.permute.xlu2 %914 }
 0x68a   :  { %v922_v52 = vsel %vm70_vm0, %v915_v41, 0  ;;  %v2728_v41 = vld [vmem:[%s3838_s9 + $0x54] sm:$0xf] }
 0x6a0   :  { %v917_v27 = vpop.permute.xlu0 %916 }
 0x6a1   :  { %v925_v32 = vsel %vm70_vm0, %v917_v27, 0  ;;  %v2371_v27 = vor.u32 %v2731_v18, %v2370_v24 }
 0x6a2   :  { %933 = vmatpush.bf16.xpose.msrb.mxu3 %v925_v32 }
 0x6a8   :  { %v953_v42 = vpop.permute.xlu1 %952  ;;  %v951_v44 = vpop.permute.xlu0 %950 }
 0x6a9   :  { %v961_v47 = vsel %vm70_vm0, %v953_v42, 0  ;;  %v958_v51 = vsel %vm70_vm0, %v951_v44, 0  ;;  %v2364_v42 = vld [vmem:[%s3838_s9 + $0x58] sm:$0xf0]  ;;  %v2727_v44 = vld [vmem:[%s3838_s9 + $0x44] sm:$0xf0] }
 0x6aa   :  { %969 = vmatpush.bf16.xpose.msrb.mxu0 %v961_v47  ;;  %934 = vmatpush.bf16.xpose.msrb.mxu3 %v922_v52 }
 0x6b1   :  { %2337 = vmatmul.msk.bf16.vlgmr.msrb.gmra.mxu3 %vm70_vm0, %v870_v49  ;;  %v2355_v49 = vor.u32 %v2727_v44, %v2354_v46  ;;  %v2865_v46 = vld [vmem:[%s3834_s3] sm:$0xff] }
 0x6b2   :  { %1064 = vmatpush.bf16.msra.mxu3 %v1052_v45  ;;  %970 = vmatpush.bf16.xpose.msrb.mxu0 %v958_v51  ;;  %v2367_v45 = vor.u32 %v2728_v41, %v2364_v42  ;;  %v2356_v51 = vld [vmem:[%s3838_s9 + $0x48] sm:$0xf0]  ;;  %v2734_v42 = vld [vmem:[%s3839_s11 + $0x80] sm:$0xff] }
 0x6b3   :  { %v2743_v41 = vld [vmem:[%s3839_s11 + $0xc8] sm:$0xff]  ;;  %v2351_v44 = vld [vmem:[%s3841_s10 + $0x1] ss:$4 sm:$0x3] }
 0x6b4   :  { %1209 = vmatpush.bf16.msra.mxu1 %v2367_v45  ;;  %v2863_v45 = vld [vmem:[%s3834_s3 + $0x10] sm:$0xff] }
 0x6b6   :  { %1065 = vmatpush.bf16.msra.mxu3 %v1051_v48  ;;  %v2726_v48 = vld [vmem:[%s3838_s9 + $0x44] sm:$0xf] }
 0x6b9   :  { %2338 = vmatmul.msk.bf16.vlgmr.msrb.gmra.mxu0 %vm70_vm0, %v871_v53 }
 0x734   :  { %v936_v54 = vpop.f32.mrf.mxu3 }
 0x735   :  { %v937_v55 = vadd.f32 %v936_v54, %v3137_v37  ;;  %v2359_v54 = vor.u32 %v2726_v48, %v2356_v51  ;;  %v1142_v51 = vperm.slane %v2351_v44, 0 }
 0x736   :  { %v972_v56 = vpop.f32.mrf.mxu0 }
 0x737   :  { %v976_v57 = vmul.f32 1.442695, %v937_v55  ;;  %v973_v58 = vadd.f32 %v972_v56, %v3137_v37  ;;  %1210 = vmatpush.bf16.msra.mxu1 %v2359_v54 }
 0x739   :  { %2830 = vpow2.f32 %v976_v57  ;;  %v978_v60 = vmul.f32 1.442695, %v973_v58 }
 0x73b   :  { %2832 = vpow2.f32 %v978_v60  ;;  %v2741_v60 = vld [vmem:[%s3839_s11 + $0xb8] sm:$0xff] }
 0x73c   :  { %v938_v59 = vpop.f32.mrf.mxu3  ;;  %1354 = vmatpush.bf16.msrb.mxu2 %v2741_v60 }
 0x73e   :  { %v974_v50 = vpop.f32.mrf.mxu0 }
 0x73f   :  { %v2831_v34 = vpop.eup %2830  ;;  %v2749_v50 = vld [vmem:[%s3839_s11 + $0xf8] sm:$0xff] }
 0x740   :  { %2339 = vmatmul.msk.f32.vlgmr.msrb.gmra.mxu1 %vm331_vm7, %v2831_v34  ;;  %1368 = vmatpush.bf16.msrb.mxu3 %v2749_v50 }
 0x741   :  { %v2833_v62 = vpop.eup %2832 }
 0x748   :  { %2340 = vmatmul.msk.f32.gmra.mxu1 %vm331_vm7, %v2833_v62 }
 0x7bd   :  { %v1003_v26 = vpop.f32.mrf.mxu1 }
 0x7be   :  { %2834 = vrcp.f32 %v1003_v26  ;;  %v2748_v26 = vld [vmem:[%s3839_s11 + $0xf0] sm:$0xff] }
 0x7bf   :  { %1369 = vmatpush.bf16.msrb.mxu3 %v2748_v26 }
 0x7c4   :  { %v2835_v63 = vpop.eup %2834 }
 0x7c5   :  { %v1011_v35 = vmul.f32 %v2835_v63, %v2831_v34  ;;  %v1006_v36 = vpop.f32.mrf.mxu1 }
 0x7c6   :  { %2836 = vrcp.f32 %v1006_v36 }
 0x7c7   :  { %v1013_v1 = vpack.c.bf16 %v1011_v35, %v1011_v35 }
 0x7c9   :  { %2341 = vmatmul.msk.bf16.vlgmr.msra.gmra.mxu2 %vm331_vm7, %v1013_v1  ;;  %v2739_v1 = vld [vmem:[%s3839_s11 + $0xa8] sm:$0xff] }
 0x7cc   :  { %v2837_v37 = vpop.eup %2836 }
 0x7cd   :  { %v1012_v2 = vmul.f32 %v2837_v37, %v2833_v62  ;;  %v2740_v62 = vld [vmem:[%s3839_s11 + $0xb0] sm:$0xff]  ;;  %v2747_v37 = vld [vmem:[%s3839_s11 + $0xe8] sm:$0xff] }
 0x7ce   :  { %1355 = vmatpush.bf16.msrb.mxu2 %v2740_v62  ;;  %1370 = vmatpush.bf16.msrb.mxu3 %v2747_v37 }
 0x7cf   :  { %v1014_v4 = vpack.c.bf16 %v1012_v2, %v1012_v2 }
 0x7d1   :  { %2342 = vmatmul.msk.bf16.vlgmr.msra.gmra.mxu3 %vm331_vm7, %v1014_v4 }
 0x7d2   :  { %1356 = vmatpush.bf16.msrb.mxu2 %v2739_v1 }
 0x84c   :  { %v1039_v6 = vpop.f32.mrf.mxu2 }
 0x84d   :  { %v3402_v0 = vadd.f32 %v1039_v6, %v3288_v8  ;;  %v2738_v6 = vld [vmem:[%s3839_s11 + $0xa0] sm:$0xff] }
 0x84e   :  { %1357 = vmatpush.bf16.msrb.mxu2 %v2738_v6 }
 0x84f   :  { %v1075_v7 = vsel %vm70_vm0, %v3402_v0, 0.0  ;;  %v1083_v9 = vmul.f32 %v3402_v0, %v3402_v0 }
 0x850   :  { %1076 = vadd.xlane.f32.xlu2 %v1075_v7  ;;  %v2746_v7 = vld [vmem:[%s3839_s11 + $0xe0] sm:$0xff] }
 0x851   :  { %v1085_v11 = vsel %vm70_vm0, %v1083_v9, 0.0  ;;  %1371 = vmatpush.bf16.msrb.mxu3 %v2746_v7 }
 0x852   :  { %1086 = vadd.xlane.f32.xlu1 %v1085_v11 }
 0x854   :  { %v1041_v12 = vpop.f32.mrf.mxu2  ;;  %v1067_v3 = vpop.f32.mrf.mxu3 }
 0x855   :  { %v3410_v14 = vadd.f32 %v1067_v3, %v3296_v17  ;;  %v2733_v17 = vld [vmem:[%s3838_s9 + $0x74] sm:$0xf0]  ;;  %1372 = vmatpush.bf16.msrb.mxu3 %v2745_v33 }
 0x856   :  { %v2379_v21 = vor.u32 %v2733_v17, %v2378_v19  ;;  %v2801_v17 = vld [vmem:[%s3836_s7 + $0x1] ss:$0 sm:$0xff]  ;;  %v2753_v33 = vld [vmem:[%s3832_s6 + $0x94] sm:$0xf0] }
 0x857   :  { %v1078_v15 = vsel %vm70_vm0, %v3410_v14, 0.0  ;;  %v1084_v8 = vmul.f32 %v3410_v14, %v3410_v14 }
 0x858   :  { %1079 = vadd.xlane.f32.xlu0 %v1078_v15  ;;  %1193 = vmatpush.bf16.msra.mxu0 %v2379_v21 }
 0x859   :  { %v1088_v16 = vsel %vm70_vm0, %v1084_v8, 0.0 }
 0x85a   :  { %1089 = vadd.xlane.f32.xlu2 %v1088_v16 }
 0x85c   :  { %v1069_v61 = vpop.f32.mrf.mxu3  ;;  %1194 = vmatpush.bf16.msra.mxu0 %v2371_v27 }
 0x860   :  { %1195 = vmatpush.bf16.msra.mxu0 %v2363_v40  ;;  %v2735_v40 = vld [vmem:[%s3839_s11 + $0x88] sm:$0xff] }
 0x864   :  { %1196 = vmatpush.bf16.msra.mxu0 %v2355_v49 }
 0x8c3   :  { %v1077_v31 = vpop.xlane.xlu2 %1076 }
 0x8c4   :  { %v3441_v32 = vmul.f32 0.015625, %v1077_v31 }
 0x8c5   :  { %v1087_v39 = vpop.xlane.xlu1 %1086 }
 0x8c6   :  { %v1093_v47 = vmul.f32 %v3441_v32, %v3441_v32  ;;  %v1091_v52 = vmul.f32 0.015625, %v1087_v39  ;;  %v1097_v61 = vsub.f32 %v3402_v0, %v3441_v32  ;;  %v2737_v32 = vld [vmem:[%s3839_s11 + $0x98] sm:$0xff]  ;;  %v2744_v39 = vld [vmem:[%s3839_s11 + $0xd0] sm:$0xff] }
 0x8c7   :  { %1358 = vmatpush.bf16.msrb.mxu2 %v2737_v32  ;;  %1373 = vmatpush.bf16.msrb.mxu3 %v2744_v39  ;;  %v2500_v32 = vld [vmem:[%s3832_s6 + $0x90] sm:$0xf] }
 0x8c8   :  { %v1095_v43 = vsub.f32 %v1091_v52, %v1093_v47  ;;  %v2742_v47 = vld [vmem:[%s3839_s11 + $0xc0] sm:$0xff]  ;;  %v2862_v52 = vld [vmem:[%s3834_s3 + $0x18] sm:$0xff]  ;;  %v2501_v39 = vor.u32 %v2753_v33, %v2500_v32 }
 0x8ca   :  { %v1099_v53 = vadd.f32 1e-05, %v1095_v43  ;;  %v2864_v43 = vld [vmem:[%s3834_s3 + $0x8] sm:$0xff] }
 0x8cb   :  { %v1080_v55 = vpop.xlane.xlu0 %1079  ;;  %1359 = vmatpush.bf16.msrb.mxu2 %v2736_v38  ;;  %1374 = vmatpush.bf16.msrb.mxu3 %v2743_v41  ;;  %v2502_v41 = vld [vmem:[%s3832_s6 + $0x98] sm:$0xf0] }
 0x8cc   :  { %2838 = vrsqrt.f32 %v1099_v53  ;;  %v1082_v56 = vmul.f32 0.015625, %v1080_v55  ;;  %vm1107_vm6 = vweird.f32 %v1099_v53 }
 0x8cd   :  { %v1090_v57 = vpop.xlane.xlu2 %1089 }
 0x8ce   :  { %v1094_v58 = vmul.f32 %v1082_v56, %v1082_v56  ;;  %v1092_v59 = vmul.f32 0.015625, %v1090_v57  ;;  %v1098_v22 = vsub.f32 %v3410_v14, %v1082_v56 }
 0x8cf   :  { %1360 = vmatpush.bf16.msrb.mxu2 %v2735_v40  ;;  %1375 = vmatpush.bf16.msrb.mxu3 %v2742_v47  ;;  %v2752_v40 = vld [vmem:[%s3832_s6 + $0x94] sm:$0xf] }
 0x8d0   :  { %v1096_v34 = vsub.f32 %v1092_v59, %v1094_v58 }
 0x8d2   :  { %v2839_v63 = vpop.eup %2838  ;;  %v1100_v35 = vadd.f32 1e-05, %v1096_v34 }
 0x8d3   :  { %v1102_v36 = vmul.f32 %v2839_v63, %v1099_v53  ;;  %vm1108_vm5 = vweird.f32 %v2839_v63  ;;  %1361 = vmatpush.bf16.msrb.mxu2 %v2734_v42  ;;  %v1143_v53 = vperm.slane %v2351_v44, 1  ;;  %v2750_v44 = vld [vmem:[%s3832_s6 + $0x84] sm:$0xf] }
 0x8d4   :  { %2840 = vrsqrt.f32 %v1100_v35  ;;  %vm1109_vm8 = vmor %vm1107_vm6, %vm1108_vm5  ;;  %vm1117_vm10 = vweird.f32 %v1100_v35 }
 0x8d5   :  { %v1103_v2 = vmul.f32 %v2839_v63, %v1102_v36 }
 0x8d7   :  { %v1104_v4 = vmul.f32 0.5, %v1103_v2  ;;  %1649 = vmatpush.msra.mxu2 %v2862_v52  ;;  %v2505_v52 = vor.u32 %v2752_v40, %v2502_v41 }
 0x8d9   :  { %v1105_v9 = vsub.f32 1.5, %v1104_v4  ;;  %1650 = vmatpush.msra.mxu2 %v2863_v45 }
 0x8da   :  { %v2841_v11 = vpop.eup %2840 }
 0x8db   :  { %v1106_v12 = vmul.f32 %v2839_v63, %v1105_v9  ;;  %v1112_v3 = vmul.f32 %v2841_v11, %v1100_v35  ;;  %vm1118_vm9 = vweird.f32 %v2841_v11  ;;  %1651 = vmatpush.msra.mxu2 %v2864_v43  ;;  %v2803_v35 = vld [vmem:[%s3840_s12 + $0x1] ss:$0 sm:$0xff] }
 0x8dc   :  { %vm1119_vm11 = vmor %vm1117_vm10, %vm1118_vm9  ;;  %v2492_v43 = vld [vmem:[%s3832_s6 + $0x80] sm:$0xf] }
 0x8dd   :  { %v1113_v15 = vmul.f32 %v2841_v11, %v1112_v3  ;;  %v1110_v8 = vsel %vm1109_vm8, %v2839_v63, %v1106_v12  ;;  %1652 = vmatpush.msra.mxu2 %v2865_v46  ;;  %v2751_v46 = vld [vmem:[%s3832_s6 + $0x84] sm:$0xf0] }
 0x8de   :  { %v1121_v20 = vmul.f32 %v1110_v8, %v1097_v61 }
 0x8df   :  { %v1114_v16 = vmul.f32 0.5, %v1113_v15 }
 0x8e0   :  { %v1124_v24 = vmul.f32 %v2801_v17, %v1121_v20 }
 0x8e1   :  { %v1115_v19 = vsub.f32 1.5, %v1114_v16 }
 0x8e2   :  { %v1127_v30 = vadd.f32 %v2802_v25, %v1124_v24  ;;  %v2755_v24 = vld [vmem:[%s3832_s6 + $0xa4] sm:$0xf0] }
 0x8e3   :  { %v1116_v21 = vmul.f32 %v2841_v11, %v1115_v19  ;;  %v2516_v19 = vld [vmem:[%s3832_s6 + $0xb0] sm:$0xf] }
 0x8e5   :  { %v1120_v5 = vsel %vm1119_vm11, %v2841_v11, %v1116_v21  ;;  %v2518_v21 = vld [vmem:[%s3832_s6 + $0xb8] sm:$0xf0] }
 0x8e6   :  { %v1122_v18 = vmul.f32 %v1120_v5, %v1098_v22  ;;  %v2508_v5 = vld [vmem:[%s3832_s6 + $0xa0] sm:$0xf] }
 0x8e8   :  { %v1125_v27 = vmul.f32 %v2801_v17, %v1122_v18  ;;  %v2757_v17 = vld [vmem:[%s3832_s6 + $0xb4] sm:$0xf0]  ;;  %v2754_v18 = vld [vmem:[%s3832_s6 + $0xa4] sm:$0xf] }
 0x8e9   :  { %v2517_v20 = vor.u32 %v2757_v17, %v2516_v19 }
 0x8ea   :  { %v1128_v10 = vadd.f32 %v2802_v25, %v1125_v27  ;;  %v2509_v25 = vor.u32 %v2755_v24, %v2508_v5  ;;  %v2510_v27 = vld [vmem:[%s3832_s6 + $0xa8] sm:$0xf0]  ;;  %v2866_v24 = vld [vmem:[%s3833_s2] sm:$0xff] }
 0x8eb   :  { %1497 = vmatpush.bf16.msrb.mxu0 %v2517_v20 }
 0x8ec   :  { %v1129_v31 = vpack.c.bf16 %v1128_v10, %v1127_v30  ;;  %v2513_v30 = vor.u32 %v2754_v18, %v2510_v27 }
 0x8ee   :  { %2384 = vmatmul.msk.bf16.vlgmr.msra.gmra.mxu0 %vm70_vm0, %v1129_v31  ;;  %2385 = vmatmul.msk.bf16.vlgmr.msra.gmra.mxu1 %vm70_vm0, %v1129_v31 }
 0x8ef   :  { %1498 = vmatpush.bf16.msrb.mxu0 %v2509_v25  ;;  %v2867_v25 = vld [vmem:[%s3833_s2 + $0x8] sm:$0xff] }
 0x8f3   :  { %1499 = vmatpush.bf16.msrb.mxu0 %v2501_v39 }
 0x96b   :  { %v1198_v48 = vpop.f32.mrf.mxu0  ;;  %v1212_v49 = vpop.f32.mrf.mxu1 }
 0x96c   :  { %v1199_v54 = vadd.f32 %v1198_v48, %v1142_v51  ;;  %v1213_v55 = vadd.f32 %v1212_v49, %v1143_v53  ;;  %v2493_v48 = vor.u32 %v2751_v46, %v2492_v43  ;;  %v2494_v49 = vld [vmem:[%s3832_s6 + $0x88] sm:$0xf0] }
 0x96e   :  { %v1217_v60 = vmax.f32 %v1199_v54, 0.0  ;;  %v1218_v50 = vmax.f32 %v1213_v55, 0.0  ;;  %1500 = vmatpush.bf16.msrb.mxu0 %v2493_v48 }
 0x973   :  { %v1200_v56 = vpop.f32.mrf.mxu0  ;;  %v1214_v57 = vpop.f32.mrf.mxu1 }
 0x974   :  { %v1201_v58 = vadd.f32 %v1200_v56, %v1142_v51  ;;  %v1215_v59 = vadd.f32 %v1214_v57, %v1143_v53  ;;  %v2497_v53 = vor.u32 %v2750_v44, %v2494_v49 }
 0x976   :  { %v1219_v34 = vmax.f32 %v1201_v58, 0.0  ;;  %v1220_v62 = vmax.f32 %v1215_v59, 0.0 }
 0x978   :  { %v1221_v26 = vpack.c.bf16 %v1219_v34, %v1217_v60  ;;  %v1222_v63 = vpack.c.bf16 %v1220_v62, %v1218_v50 }
 0x97a   :  { %1362 = vmatmul.bf16.vlgmr.msrb.gmra.mxu2 %v1221_v26  ;;  %1376 = vmatmul.bf16.vlgmr.msrb.gmra.mxu3 %v1222_v63 }
 0x9fd   :  { %v1363_v36 = vpop.f32.mrf.mxu2  ;;  %v1377_v1 = vpop.f32.mrf.mxu3 }
 0x9fe   :  { %v1364_v37 = vadd.f32 %v2803_v35, %v1363_v36 }
 0xa00   :  { %v1378_v2 = vadd.f32 %v1377_v1, %v1364_v37 }
 0xa02   :  { %v3547_v4 = vadd.f32 %v1378_v2, %v3402_v0 }
 0xa04   :  { %v1386_v6 = vsel %vm70_vm0, %v3547_v4, 0.0  ;;  %v1394_v7 = vmul.f32 %v3547_v4, %v3547_v4 }
 0xa05   :  { %v1365_v9 = vpop.f32.mrf.mxu2  ;;  %1387 = vadd.xlane.f32.xlu0 %v1386_v6  ;;  %v1379_v3 = vpop.f32.mrf.mxu3 }
 0xa06   :  { %v1366_v11 = vadd.f32 %v2803_v35, %v1365_v9  ;;  %v1396_v12 = vsel %vm70_vm0, %v1394_v7, 0.0 }
 0xa07   :  { %1397 = vadd.xlane.f32.xlu2 %v1396_v12 }
 0xa08   :  { %v1380_v15 = vadd.f32 %v1379_v3, %v1366_v11  ;;  %v2796_v11 = vld [vmem:[%s3852_s27 + $0x2] ss:$0 sm:$0xff] }
 0xa0a   :  { %v3555_v8 = vadd.f32 %v1380_v15, %v3410_v14  ;;  %v2756_v14 = vld [vmem:[%s3832_s6 + $0xb4] sm:$0xf] }
 0xa0b   :  { %v2521_v22 = vor.u32 %v2756_v14, %v2518_v21 }
 0xa0c   :  { %v1389_v0 = vsel %vm70_vm0, %v3555_v8, 0.0  ;;  %v1395_v16 = vmul.f32 %v3555_v8, %v3555_v8 }
 0xa0d   :  { %1390 = vadd.xlane.f32.xlu1 %v1389_v0  ;;  %1511 = vmatpush.bf16.msrb.mxu1 %v2521_v22 }
 0xa0e   :  { %v1399_v61 = vsel %vm70_vm0, %v1395_v16, 0.0  ;;  %v2797_v16 = vld [vmem:[%s3831_s5 + $0x2] ss:$0 sm:$0xff] }
 0xa0f   :  { %1400 = vadd.xlane.f32.xlu0 %v1399_v61 }
 0xa11   :  { %1512 = vmatpush.bf16.msrb.mxu1 %v2513_v30  ;;  %v2868_v30 = vld [vmem:[%s3833_s2 + $0x10] sm:$0xff] }
 0xa15   :  { %1513 = vmatpush.bf16.msrb.mxu1 %v2505_v52 }
 0xa19   :  { %1514 = vmatpush.bf16.msrb.mxu1 %v2497_v53 }
 0xa78   :  { %v1388_v10 = vpop.xlane.xlu0 %1387 }
 0xa79   :  { %v1392_v31 = vmul.f32 0.015625, %v1388_v10 }
 0xa7a   :  { %v1398_v38 = vpop.xlane.xlu2 %1397 }
 0xa7b   :  { %v1404_v42 = vmul.f32 %v1392_v31, %v1392_v31  ;;  %v1402_v47 = vmul.f32 0.015625, %v1398_v38  ;;  %v1408_v7 = vsub.f32 %v3547_v4, %v1392_v31  ;;  %v2869_v31 = vld [vmem:[%s3833_s2 + $0x18] sm:$0xff] }
 0xa7d   :  { %v1406_v45 = vsub.f32 %v1402_v47, %v1404_v42 }
 0xa7f   :  { %v1410_v51 = vadd.f32 1e-05, %v1406_v45 }
 0xa80   :  { %v1391_v54 = vpop.xlane.xlu1 %1390 }
 0xa81   :  { %2842 = vrsqrt.f32 %v1410_v51  ;;  %v1393_v55 = vmul.f32 0.015625, %v1391_v54  ;;  %vm1418_vm13 = vweird.f32 %v1410_v51 }
 0xa82   :  { %v1401_v56 = vpop.xlane.xlu0 %1400 }
 0xa83   :  { %v1405_v57 = vmul.f32 %v1393_v55, %v1393_v55  ;;  %v1403_v58 = vmul.f32 0.015625, %v1401_v56  ;;  %v1409_v15 = vsub.f32 %v3555_v8, %v1393_v55 }
 0xa85   :  { %v1407_v59 = vsub.f32 %v1403_v58, %v1405_v57 }
 0xa87   :  { %v2843_v60 = vpop.eup %2842  ;;  %v1411_v50 = vadd.f32 1e-05, %v1407_v59 }
 0xa88   :  { %v1413_v34 = vmul.f32 %v2843_v60, %v1410_v51  ;;  %vm1419_vm12 = vweird.f32 %v2843_v60 }
 0xa89   :  { %2844 = vrsqrt.f32 %v1411_v50  ;;  %vm1420_vm14 = vmor %vm1418_vm13, %vm1419_vm12  ;;  %vm1428_vm1 = vweird.f32 %v1411_v50 }
 0xa8a   :  { %v1414_v62 = vmul.f32 %v2843_v60, %v1413_v34 }
 0xa8c   :  { %v1415_v26 = vmul.f32 0.5, %v1414_v62 }
 0xa8e   :  { %v1416_v63 = vsub.f32 1.5, %v1415_v26 }
 0xa8f   :  { %v2845_v35 = vpop.eup %2844 }
 0xa90   :  { %v1417_v36 = vmul.f32 %v2843_v60, %v1416_v63  ;;  %v1423_v1 = vmul.f32 %v2845_v35, %v1411_v50  ;;  %vm1429_vm15 = vweird.f32 %v2845_v35 }
 0xa91   :  { %vm1430_vm2 = vmor %vm1428_vm1, %vm1429_vm15 }
 0xa92   :  { %v1424_v37 = vmul.f32 %v2845_v35, %v1423_v1  ;;  %v1421_v2 = vsel %vm1420_vm14, %v2843_v60, %v1417_v36 }
 0xa93   :  { %v1432_v12 = vmul.f32 %v1421_v2, %v1408_v7 }
 0xa94   :  { %v1425_v6 = vmul.f32 0.5, %v1424_v37 }
 0xa95   :  { %v1435_v61 = vmul.f32 %v2796_v11, %v1432_v12 }
 0xa96   :  { %v1426_v9 = vsub.f32 1.5, %v1425_v6 }
 0xa97   :  { %v1438_v14 = vadd.f32 %v2797_v16, %v1435_v61 }
 0xa98   :  { %v1427_v3 = vmul.f32 %v2845_v35, %v1426_v9 }
 0xa9a   :  { %v1431_v0 = vsel %vm1430_vm2, %v2845_v35, %v1427_v3 }
 0xa9b   :  { %v1433_v19 = vmul.f32 %v1431_v0, %v1409_v15 }
 0xa9d   :  { %v1436_v17 = vmul.f32 %v2796_v11, %v1433_v19 }
 0xa9f   :  { %v1439_v20 = vadd.f32 %v2797_v16, %v1436_v17 }
 0xaa1   :  { %v1440_v21 = vpack.c.bf16 %v1439_v20, %v1438_v14 }
 0xaa3   :  { %2522 = vmatmul.msk.bf16.vlgmr.msrb.gmra.mxu0 %vm70_vm0, %v1440_v21  ;;  %2523 = vmatmul.msk.bf16.vlgmr.msrb.gmra.mxu1 %vm70_vm0, %v1440_v21 }
 0xb20   :  { %v3620_v22 = vpop.f32.mrf.mxu0  ;;  %v1516_v5 = vpop.f32.mrf.mxu1 }
 0xb21   :  { %v1539_v18 = vmul.f32 %v2866_v24, %v1516_v5  ;;  %v1540_v27 = vmul.f32 %v2867_v25, %v1516_v5  ;;  %v1541_v10 = vmul.f32 %v2868_v30, %v1516_v5  ;;  %v1542_v32 = vmul.f32 %v2869_v31, %v1516_v5 }
 0xb22   :  { %v1525_v33 = vmul.f32 %v3620_v22, %v3068_v13  ;;  %v1526_v38 = vmul.f32 %v3620_v22, %v3074_v23  ;;  %v1523_v39 = vmul.f32 %v3620_v22, %v3080_v29  ;;  %v1524_v47 = vmul.f32 %v3620_v22, %v3078_v28 }
 0xb23   :  { %v1547_v40 = vpack.c.bf16 %v1539_v18, %v1539_v18  ;;  %v1548_v41 = vpack.c.bf16 %v1540_v27, %v1540_v27  ;;  %v1549_v42 = vpack.c.bf16 %v1541_v10, %v1541_v10  ;;  %v1550_v52 = vpack.c.bf16 %v1542_v32, %v1542_v32 }
 0xb24   :  { %v1533_v45 = vpack.c.bf16 %v1525_v33, %v1525_v33  ;;  %v1534_v43 = vpack.c.bf16 %v1526_v38, %v1526_v38  ;;  %v1531_v46 = vpack.c.bf16 %v1523_v39, %v1523_v39  ;;  %v1532_v48 = vpack.c.bf16 %v1524_v47, %v1524_v47 }
 0xb25   :  { %v1672_v44 = vunpack.c.l.b16 %v1549_v42  ;;  %v1673_v49 = vunpack.c.l.b16 %v1550_v52  ;;  %v1670_v59 = vunpack.c.l.b16 %v1547_v40  ;;  %v1671_v60 = vunpack.c.l.b16 %v1548_v41  ;;  %v2870_v41 = vld [vmem:[%s3835_s1] sm:$0xff] }
 0xb26   :  { %v1561_v51 = vunpack.c.l.b16 %v1533_v45  ;;  %v1562_v53 = vunpack.c.l.b16 %v1534_v43  ;;  %v1559_v54 = vunpack.c.l.b16 %v1531_v46  ;;  %v1560_v55 = vunpack.c.l.b16 %v1532_v48 }
 0xb27   :  { %v1675_v57 = vpack.c.b16 %v1673_v49, %v1672_v44  ;;  %v1674_v26 = vpack.c.b16 %v1671_v60, %v1670_v59 }
 0xb28   :  { %v1504_v56 = vpop.f32.mrf.mxu0  ;;  %v1564_v58 = vpack.c.b16 %v1562_v53, %v1561_v51  ;;  %v1563_v50 = vpack.c.b16 %v1560_v55, %v1559_v54 }
 0xb29   :  { %1687 = vmatpush.bf16.msra.mxu3 %v1675_v57  ;;  %v1529_v34 = vmul.f32 %v1504_v56, %v3068_v13  ;;  %v1530_v62 = vmul.f32 %v1504_v56, %v3074_v23  ;;  %v1527_v35 = vmul.f32 %v1504_v56, %v3080_v29  ;;  %v1528_v36 = vmul.f32 %v1504_v56, %v3078_v28  ;;  %v1518_v23 = vpop.f32.mrf.mxu1 }
 0xb2a   :  { %1567 = vrot.lane.b32.xlu1 %v1564_v58, %s2871_s19  ;;  %1565 = vrot.lane.b32.xlu2 %v1563_v50, %s2871_s19  ;;  %v1545_v3 = vmul.f32 %v2868_v30, %v1518_v23  ;;  %v1546_v15 = vmul.f32 %v2869_v31, %v1518_v23  ;;  %v1543_v29 = vmul.f32 %v2866_v24, %v1518_v23 }
 0xb2b   :  { %v1537_v63 = vpack.c.bf16 %v1529_v34, %v1529_v34  ;;  %v1538_v1 = vpack.c.bf16 %v1530_v62, %v1530_v62  ;;  %v1535_v2 = vpack.c.bf16 %v1527_v35, %v1527_v35  ;;  %v1536_v6 = vpack.c.bf16 %v1528_v36, %v1528_v36 }
 0xb2c   :  { %v1544_v28 = vmul.f32 %v2867_v25, %v1518_v23  ;;  %v1553_v16 = vpack.c.bf16 %v1545_v3, %v1545_v3  ;;  %v1554_v61 = vpack.c.bf16 %v1546_v15, %v1546_v15  ;;  %v1551_v17 = vpack.c.bf16 %v1543_v29, %v1543_v29  ;;  %v2762_v23 = vld [vmem:[%s3838_s9 + $0xa4] sm:$0xf]  ;;  %v2559_v15 = vld [vmem:[%s3838_s9 + $0xa8] sm:$0xf0] }
 0xb2d   :  { %1688 = vmatpush.bf16.msra.mxu3 %v1674_v26  ;;  %v1597_v37 = vunpack.c.l.b16 %v1537_v63  ;;  %v1598_v7 = vunpack.c.l.b16 %v1538_v1  ;;  %v1595_v9 = vunpack.c.l.b16 %v1535_v2  ;;  %v1596_v11 = vunpack.c.l.b16 %v1536_v6  ;;  %v2765_v2 = vld [vmem:[%s3838_s9 + $0xb4] sm:$0xf0]  ;;  %v2764_v6 = vld [vmem:[%s3838_s9 + $0xb4] sm:$0xf] }
 0xb2e   :  { %v1552_v14 = vpack.c.bf16 %v1544_v28, %v1544_v28  ;;  %v1700_v20 = vunpack.c.l.b16 %v1553_v16  ;;  %v1701_v21 = vunpack.c.l.b16 %v1554_v61  ;;  %v1698_v32 = vunpack.c.l.b16 %v1551_v17  ;;  %v2549_v16 = vld [vmem:[%s3838_s9 + $0x90] sm:$0xf]  ;;  %v2761_v61 = vld [vmem:[%s3838_s9 + $0x94] sm:$0xf0] }
 0xb2f   :  { %v1600_v12 = vpack.c.b16 %v1598_v7, %v1597_v37  ;;  %v1599_v13 = vpack.c.b16 %v1596_v11, %v1595_v9  ;;  %v1521_v31 = vpack.c.bf16 %v3620_v22, %v3620_v22  ;;  %v1522_v39 = vpack.c.bf16 %v1504_v56, %v1504_v56  ;;  %v2567_v9 = vld [vmem:[%s3838_s9 + $0xb8] sm:$0xf0] }
 0xb30   :  { %v1703_v10 = vpack.c.b16 %v1701_v21, %v1700_v20  ;;  %v1699_v30 = vunpack.c.l.b16 %v1552_v14  ;;  %v2570_v11 = vor.u32 %v2764_v6, %v2567_v9  ;;  %v2562_v29 = vor.u32 %v2762_v23, %v2559_v15  ;;  %v2760_v14 = vld [vmem:[%s3838_s9 + $0x94] sm:$0xf]  ;;  %v2551_v20 = vld [vmem:[%s3838_s9 + $0x98] sm:$0xf0] }
 0xb31   :  { %1603 = vrot.lane.b32.xlu0 %v1600_v12, %s2871_s19  ;;  %v2557_v12 = vld [vmem:[%s3838_s9 + $0xa0] sm:$0xf]  ;;  %v2550_v17 = vor.u32 %v2761_v61, %v2549_v16  ;;  %v2769_v23 = vld [vmem:[%s3839_s11 + $0x118] sm:$0xff]  ;;  %v2768_v15 = vld [vmem:[%s3839_s11 + $0x110] sm:$0xff] }
 0xb32   :  { %1601 = vrot.lane.b32.xlu1 %v1599_v13, %s2871_s19  ;;  %v1702_v25 = vpack.c.b16 %v1699_v30, %v1698_v32  ;;  %1858 = vmatpush.bf16.msrb.mxu2 %v2570_v11  ;;  %v2763_v13 = vld [vmem:[%s3838_s9 + $0xa4] sm:$0xf0]  ;;  %v2766_v16 = vld [vmem:[%s3839_s11 + $0x100] sm:$0xff] }
 0xb33   :  { %v2558_v3 = vor.u32 %v2763_v13, %v2557_v12  ;;  %v2759_v32 = vld [vmem:[%s3838_s9 + $0x84] sm:$0xf0] }
 0xb34   :  { %v2775_v61 = vld [vmem:[%s3839_s11 + $0x148] sm:$0xff] }
 0xb36   :  { %1859 = vmatpush.bf16.msrb.mxu2 %v2562_v29  ;;  %v2777_v29 = vld [vmem:[%s3839_s11 + $0x158] sm:$0xff] }
 0xb84   :  { %v1566_v5 = vpop.permute.xlu2 %1565 }
 0xb85   :  { %v1573_v18 = vsel %vm70_vm0, %v1566_v5, 0 }
 0xb9c   :  { %v1568_v0 = vpop.permute.xlu1 %1567 }
 0xb9d   :  { %v1576_v19 = vsel %vm70_vm0, %v1568_v0, 0 }
 0xb9e   :  { %1584 = vmatpush.bf16.xpose.msra.mxu0 %v1576_v19 }
 0xba3   :  { %v1604_v27 = vpop.permute.xlu0 %1603 }
 0xba4   :  { %v1612_v24 = vsel %vm70_vm0, %v1604_v27, 0  ;;  %v1602_v33 = vpop.permute.xlu1 %1601  ;;  %v2554_v27 = vor.u32 %v2760_v14, %v2551_v20 }
 0xba5   :  { %1620 = vmatpush.bf16.xpose.msra.mxu1 %v1612_v24  ;;  %v1609_v38 = vsel %vm70_vm0, %v1602_v33, 0  ;;  %v2758_v24 = vld [vmem:[%s3838_s9 + $0x84] sm:$0xf] }
 0xba6   :  { %1585 = vmatpush.bf16.xpose.msra.mxu0 %v1573_v18  ;;  %1860 = vmatpush.bf16.msrb.mxu2 %v2554_v27 }
 0xbad   :  { %2524 = vmatmul.msk.bf16.vlgmr.msra.gmra.mxu0 %vm70_vm0, %v1521_v31  ;;  %1621 = vmatpush.bf16.xpose.msra.mxu1 %v1609_v38 }
 0xbae   :  { %1715 = vmatpush.bf16.msrb.mxu0 %v1703_v10  ;;  %v2541_v10 = vld [vmem:[%s3838_s9 + $0x80] sm:$0xf] }
 0xbaf   :  { %v2542_v30 = vor.u32 %v2759_v32, %v2541_v10 }
 0xbb2   :  { %1716 = vmatpush.bf16.msrb.mxu0 %v1702_v25  ;;  %v2543_v25 = vld [vmem:[%s3838_s9 + $0x88] sm:$0xf0] }
 0xbb3   :  { %v2546_v38 = vor.u32 %v2758_v24, %v2543_v25 }
 0xbb4   :  { %2525 = vmatmul.msk.bf16.vlgmr.msra.gmra.mxu1 %vm70_vm0, %v1522_v39 }
 0xbb5   :  { %1861 = vmatpush.bf16.msrb.mxu2 %v2546_v38 }
 0xc2a   :  { %v1587_v40 = vpop.f32.mrf.mxu0 }
 0xc2b   :  { %v1588_v42 = vadd.f32 %v2870_v41, %v1587_v40 }
 0xc2d   :  { %v1627_v47 = vmul.f32 1.442695, %v1588_v42 }
 0xc2f   :  { %2846 = vpow2.f32 %v1627_v47  ;;  %v2773_v47 = vld [vmem:[%s3839_s11 + $0x138] sm:$0xff] }
 0xc30   :  { %2005 = vmatpush.bf16.msrb.mxu3 %v2773_v47 }
 0xc31   :  { %v1623_v22 = vpop.f32.mrf.mxu1 }
 0xc32   :  { %v1589_v52 = vpop.f32.mrf.mxu0  ;;  %v1624_v45 = vadd.f32 %v2870_v41, %v1623_v22 }
 0xc33   :  { %v2781_v52 = vld [vmem:[%s3839_s11 + $0x178] sm:$0xff] }
 0xc34   :  { %v1629_v46 = vmul.f32 1.442695, %v1624_v45  ;;  %v2772_v45 = vld [vmem:[%s3839_s11 + $0x130] sm:$0xff]  ;;  %2019 = vmatpush.bf16.msra.mxu0 %v2781_v52 }
 0xc35   :  { %v2847_v43 = vpop.eup %2846  ;;  %2006 = vmatpush.bf16.msrb.mxu3 %v2772_v45 }
 0xc36   :  { %2526 = vmatmul.msk.f32.vlgmr.msra.gmra.mxu2 %vm331_vm7, %v2847_v43  ;;  %2848 = vpow2.f32 %v1629_v46 }
 0xc39   :  { %v1625_v44 = vpop.f32.mrf.mxu1 }
 0xc3c   :  { %v2849_v48 = vpop.eup %2848 }
 0xc3e   :  { %2527 = vmatmul.msk.f32.gmra.mxu2 %vm331_vm7, %v2849_v48 }
 0xcb9   :  { %v1654_v49 = vpop.f32.mrf.mxu2 }
 0xcba   :  { %2850 = vrcp.f32 %v1654_v49  ;;  %v2779_v49 = vld [vmem:[%s3839_s11 + $0x168] sm:$0xff] }
 0xcc0   :  { %v2851_v51 = vpop.eup %2850 }
 0xcc1   :  { %v1662_v53 = vmul.f32 %v2851_v51, %v2847_v43  ;;  %v1657_v54 = vpop.f32.mrf.mxu2  ;;  %v2780_v43 = vld [vmem:[%s3839_s11 + $0x170] sm:$0xff] }
 0xcc2   :  { %2852 = vrcp.f32 %v1657_v54  ;;  %2020 = vmatpush.bf16.msra.mxu0 %v2780_v43  ;;  %v2770_v54 = vld [vmem:[%s3839_s11 + $0x120] sm:$0xff] }
 0xcc3   :  { %v1664_v55 = vpack.c.bf16 %v1662_v53, %v1662_v53 }
 0xcc5   :  { %2528 = vmatmul.msk.bf16.vlgmr.msra.gmra.mxu3 %vm331_vm7, %v1664_v55 }
 0xcc6   :  { %2021 = vmatpush.bf16.msra.mxu0 %v2779_v49 }
 0xcc8   :  { %v2853_v56 = vpop.eup %2852 }
 0xcc9   :  { %v1663_v57 = vmul.f32 %v2853_v56, %v2849_v48  ;;  %v2771_v48 = vld [vmem:[%s3839_s11 + $0x128] sm:$0xff] }
 0xcca   :  { %2007 = vmatpush.bf16.msrb.mxu3 %v2771_v48 }
 0xccb   :  { %v1665_v58 = vpack.c.bf16 %v1663_v57, %v1663_v57 }
 0xccd   :  { %2529 = vmatmul.msk.bf16.vlgmr.msrb.gmra.mxu0 %vm331_vm7, %v1665_v58 }
 0xcce   :  { %2008 = vmatpush.bf16.msrb.mxu3 %v2770_v54 }
 0xcd2   :  { %2009 = vmatpush.bf16.msrb.mxu3 %v2769_v23 }
 0xcd6   :  { %2010 = vmatpush.bf16.msrb.mxu3 %v2768_v15 }
 0xd48   :  { %v1690_v59 = vpop.f32.mrf.mxu3 }
 0xd49   :  { %v3666_v60 = vadd.f32 %v1690_v59, %v3547_v4 }
 0xd4a   :  { %v1718_v50 = vpop.f32.mrf.mxu0 }
 0xd4b   :  { %v1726_v34 = vsel %vm70_vm0, %v3666_v60, 0.0  ;;  %v1734_v62 = vmul.f32 %v3666_v60, %v3666_v60  ;;  %v3673_v26 = vadd.f32 %v1718_v50, %v3555_v8  ;;  %v2565_v8 = vld [vmem:[%s3838_s9 + $0xb0] sm:$0xf] }
 0xd4c   :  { %1727 = vadd.xlane.f32.xlu0 %v1726_v34  ;;  %v2566_v7 = vor.u32 %v2765_v2, %v2565_v8 }
 0xd4d   :  { %v1736_v63 = vsel %vm70_vm0, %v1734_v62, 0.0  ;;  %v1729_v35 = vsel %vm70_vm0, %v3673_v26, 0.0  ;;  %v1735_v4 = vmul.f32 %v3673_v26, %v3673_v26 }
 0xd4e   :  { %1737 = vadd.xlane.f32.xlu1 %v1736_v63  ;;  %1730 = vadd.xlane.f32.xlu2 %v1729_v35 }
 0xd4f   :  { %v1739_v37 = vsel %vm70_vm0, %v1735_v4, 0.0  ;;  %1844 = vmatpush.bf16.msrb.mxu1 %v2566_v7  ;;  %v2804_v4 = vld [vmem:[%s3836_s7 + $0x2] ss:$0 sm:$0xff] }
 0xd50   :  { %v1692_v36 = vpop.f32.mrf.mxu3  ;;  %v2805_v7 = vld [vmem:[%s3837_s8 + $0x2] ss:$0 sm:$0xff] }
 0xd52   :  { %v1720_v1 = vpop.f32.mrf.mxu0 }
 0xd53   :  { %1845 = vmatpush.bf16.msrb.mxu1 %v2558_v3  ;;  %v2778_v3 = vld [vmem:[%s3839_s11 + $0x160] sm:$0xff] }
 0xd54   :  { %1740 = vadd.xlane.f32.xlu0 %v1739_v37  ;;  %2022 = vmatpush.bf16.msra.mxu0 %v2778_v3 }
 0xd57   :  { %1846 = vmatpush.bf16.msrb.mxu1 %v2550_v17  ;;  %v2538_v17 = vld [vmem:[%s3841_s10 + $0x2] ss:$4 sm:$0x3] }
 0xd58   :  { %2023 = vmatpush.bf16.msra.mxu0 %v2777_v29  ;;  %v1793_v20 = vperm.slane %v2538_v17, 0  ;;  %v1794_v27 = vperm.slane %v2538_v17, 1 }
 0xd5b   :  { %1847 = vmatpush.bf16.msrb.mxu1 %v2542_v30 }
 0xdbf   :  { %v1728_v0 = vpop.xlane.xlu0 %1727 }
 0xdc0   :  { %v3705_v28 = vmul.f32 0.015625, %v1728_v0  ;;  %v2767_v0 = vld [vmem:[%s3839_s11 + $0x108] sm:$0xff] }
 0xdc1   :  { %v1738_v19 = vpop.xlane.xlu1 %1737  ;;  %v1731_v18 = vpop.xlane.xlu2 %1730  ;;  %2011 = vmatpush.bf16.msrb.mxu3 %v2767_v0 }
 0xdc2   :  { %v1744_v21 = vmul.f32 %v3705_v28, %v3705_v28  ;;  %v1742_v5 = vmul.f32 0.015625, %v1738_v19  ;;  %v1733_v33 = vmul.f32 0.015625, %v1731_v18  ;;  %v1748_v63 = vsub.f32 %v3666_v60, %v3705_v28  ;;  %v2776_v28 = vld [vmem:[%s3839_s11 + $0x150] sm:$0xff]  ;;  %v2774_v19 = vld [vmem:[%s3839_s11 + $0x140] sm:$0xff] }
 0xdc3   :  { %2024 = vmatpush.bf16.msra.mxu0 %v2776_v28 }
 0xdc4   :  { %v1746_v31 = vsub.f32 %v1742_v5, %v1744_v21  ;;  %v1745_v41 = vmul.f32 %v1733_v33, %v1733_v33  ;;  %v1749_v37 = vsub.f32 %v3673_v26, %v1733_v33 }
 0xdc5   :  { %2012 = vmatpush.bf16.msrb.mxu3 %v2766_v16 }
 0xdc6   :  { %v1750_v39 = vadd.f32 1e-05, %v1746_v31 }
 0xdc7   :  { %v1741_v40 = vpop.xlane.xlu0 %1740  ;;  %2025 = vmatpush.bf16.msra.mxu0 %v2775_v61 }
 0xdc8   :  { %2854 = vrsqrt.f32 %v1750_v39  ;;  %v1743_v42 = vmul.f32 0.015625, %v1741_v40  ;;  %vm1758_vm3 = vweird.f32 %v1750_v39 }
 0xdca   :  { %v1747_v22 = vsub.f32 %v1743_v42, %v1745_v41  ;;  %v2806_v41 = vld [vmem:[%s3840_s12 + $0x2] ss:$0 sm:$0xff] }
 0xdcb   :  { %2026 = vmatpush.bf16.msra.mxu0 %v2774_v19 }
 0xdcc   :  { %v1751_v46 = vadd.f32 1e-05, %v1747_v22 }
 0xdce   :  { %v2855_v44 = vpop.eup %2854  ;;  %2856 = vrsqrt.f32 %v1751_v46  ;;  %vm1768_vm6 = vweird.f32 %v1751_v46 }
 0xdcf   :  { %v1753_v51 = vmul.f32 %v2855_v44, %v1750_v39  ;;  %vm1759_vm7 = vweird.f32 %v2855_v44 }
 0xdd0   :  { %vm1760_vm4 = vmor %vm1758_vm3, %vm1759_vm7 }
 0xdd1   :  { %v1754_v53 = vmul.f32 %v2855_v44, %v1753_v51 }
 0xdd3   :  { %v1755_v55 = vmul.f32 0.5, %v1754_v53 }
 0xdd4   :  { %v2857_v56 = vpop.eup %2856 }
 0xdd5   :  { %v1756_v57 = vsub.f32 1.5, %v1755_v55  ;;  %v1763_v58 = vmul.f32 %v2857_v56, %v1751_v46  ;;  %vm1769_vm5 = vweird.f32 %v2857_v56 }
 0xdd6   :  { %vm1770_vm8 = vmor %vm1768_vm6, %vm1769_vm5 }
 0xdd7   :  { %v1757_v59 = vmul.f32 %v2855_v44, %v1756_v57  ;;  %v1764_v50 = vmul.f32 %v2857_v56, %v1763_v58 }
 0xdd9   :  { %v1761_v34 = vsel %vm1760_vm4, %v2855_v44, %v1757_v59  ;;  %v1765_v62 = vmul.f32 0.5, %v1764_v50  ;;  %v2784_v59 = vld [vmem:[%s3845_s15 + $0x10] sm:$0xff] }
 0xdda   :  { %v1772_v36 = vmul.f32 %v1761_v34, %v1748_v63  ;;  %v2783_v63 = vld [vmem:[%s3845_s15 + $0x8] sm:$0xff] }
 0xddb   :  { %v1766_v35 = vsub.f32 1.5, %v1765_v62 }
 0xddc   :  { %v1775_v2 = vmul.f32 %v2804_v4, %v1772_v36 }
 0xddd   :  { %v1767_v1 = vmul.f32 %v2857_v56, %v1766_v35 }
 0xdde   :  { %v1778_v11 = vadd.f32 %v2805_v7, %v1775_v2 }
 0xddf   :  { %v1771_v8 = vsel %vm1770_vm8, %v2857_v56, %v1767_v1 }
 0xde0   :  { %v1773_v6 = vmul.f32 %v1771_v8, %v1749_v37 }
 0xde2   :  { %v1776_v9 = vmul.f32 %v2804_v4, %v1773_v6  ;;  %v2782_v4 = vld [vmem:[%s3845_s15] sm:$0xff] }
 0xde4   :  { %v1779_v12 = vadd.f32 %v2805_v7, %v1776_v9 }
 0xde6   :  { %v1780_v13 = vpack.c.bf16 %v1779_v12, %v1778_v11 }
 0xde8   :  { %2571 = vmatmul.msk.bf16.vlgmr.msrb.gmra.mxu1 %vm70_vm0, %v1780_v13  ;;  %2572 = vmatmul.msk.bf16.vlgmr.msrb.gmra.mxu2 %vm70_vm0, %v1780_v13 }
 0xe65   :  { %v1849_v14 = vpop.f32.mrf.mxu1 }
 0xe66   :  { %v1850_v5 = vadd.f32 %v1849_v14, %v1793_v20  ;;  %v2807_v14 = vld [vmem:[%s3842_s13] ss:$0 sm:$0xff] }
 0xe68   :  { %v1868_v32 = vmax.f32 %v1850_v5, 0.0 }
 0xe6b   :  { %v1863_v21 = vpop.f32.mrf.mxu2 }
 0xe6c   :  { %v1864_v24 = vadd.f32 %v1863_v21, %v1794_v27 }
 0xe6d   :  { %v1851_v18 = vpop.f32.mrf.mxu1 }
 0xe6e   :  { %v1852_v10 = vadd.f32 %v1851_v18, %v1793_v20  ;;  %v1869_v38 = vmax.f32 %v1864_v24, 0.0 }
 0xe70   :  { %v1870_v30 = vmax.f32 %v1852_v10, 0.0 }
 0xe72   :  { %v1872_v25 = vpack.c.bf16 %v1870_v30, %v1868_v32  ;;  %v2808_v32 = vld [vmem:[%s3843_s14] ss:$0 sm:$0xff] }
 0xe73   :  { %v1865_v31 = vpop.f32.mrf.mxu2 }
 0xe74   :  { %v1866_v33 = vadd.f32 %v1865_v31, %v1794_v27  ;;  %2013 = vmatmul.bf16.vlgmr.msrb.gmra.mxu3 %v1872_v25 }
 0xe76   :  { %v1871_v39 = vmax.f32 %v1866_v33, 0.0 }
 0xe78   :  { %v1873_v40 = vpack.c.bf16 %v1871_v39, %v1869_v38  ;;  %v2809_v38 = vld [vmem:[%s3844_s16] ss:$0 sm:$0xff] }
 0xe7a   :  { %2027 = vmatmul.bf16.vlgmr.msra.gmra.mxu0 %v1873_v40 }
 0xef7   :  { %v2014_v42 = vpop.f32.mrf.mxu3  ;;  %v2028_v47 = vpop.f32.mrf.mxu0 }
 0xef8   :  { %v2015_v52 = vadd.f32 %v2806_v41, %v2014_v42 }
 0xefa   :  { %v2029_v22 = vadd.f32 %v2028_v47, %v2015_v52 }
 0xefc   :  { %v2033_v45 = vadd.f32 %v2029_v22, %v3666_v60  ;;  %v2785_v60 = vld [vmem:[%s3845_s15 + $0x18] sm:$0xff] }
 0xefd   :  { %2139 = vmatpush.bf16.msra.mxu1 %v2785_v60 }
 0xefe   :  { %v2037_v43 = vsel %vm70_vm0, %v2033_v45, 0.0  ;;  %v2045_v46 = vmul.f32 %v2033_v45, %v2033_v45 }
 0xeff   :  { %v2016_v44 = vpop.f32.mrf.mxu3  ;;  %2038 = vadd.xlane.f32.xlu2 %v2037_v43  ;;  %v2030_v51 = vpop.f32.mrf.mxu0 }
 0xf00   :  { %v2017_v48 = vadd.f32 %v2806_v41, %v2016_v44  ;;  %v2047_v49 = vsel %vm70_vm0, %v2045_v46, 0.0 }
 0xf01   :  { %2048 = vadd.xlane.f32.xlu0 %v2047_v49  ;;  %2140 = vmatpush.bf16.msra.mxu1 %v2784_v59 }
 0xf02   :  { %v2031_v53 = vadd.f32 %v2030_v51, %v2017_v48 }
 0xf04   :  { %v2034_v54 = vadd.f32 %v2031_v53, %v3673_v26 }
 0xf05   :  { %2141 = vmatpush.bf16.msra.mxu1 %v2783_v63 }
 0xf06   :  { %v2040_v55 = vsel %vm70_vm0, %v2034_v54, 0.0  ;;  %v2046_v56 = vmul.f32 %v2034_v54, %v2034_v54 }
 0xf07   :  { %2041 = vadd.xlane.f32.xlu1 %v2040_v55 }
 0xf08   :  { %v2050_v57 = vsel %vm70_vm0, %v2046_v56, 0.0 }
 0xf09   :  { %2051 = vadd.xlane.f32.xlu2 %v2050_v57  ;;  %2142 = vmatpush.bf16.msra.mxu1 %v2782_v4 }
 0xf72   :  { %v2039_v58 = vpop.xlane.xlu2 %2038 }
 0xf73   :  { %v2043_v50 = vmul.f32 0.015625, %v2039_v58 }
 0xf74   :  { %v2049_v34 = vpop.xlane.xlu0 %2048 }
 0xf75   :  { %v2055_v26 = vmul.f32 %v2043_v50, %v2043_v50  ;;  %v2053_v62 = vmul.f32 0.015625, %v2049_v34  ;;  %v2059_v19 = vsub.f32 %v2033_v45, %v2043_v50 }
 0xf77   :  { %v2057_v35 = vsub.f32 %v2053_v62, %v2055_v26 }
 0xf79   :  { %v2061_v36 = vadd.f32 1e-05, %v2057_v35 }
 0xf7a   :  { %v2042_v1 = vpop.xlane.xlu1 %2041 }
 0xf7b   :  { %2858 = vrsqrt.f32 %v2061_v36  ;;  %v2044_v37 = vmul.f32 0.015625, %v2042_v1  ;;  %vm2069_vm10 = vweird.f32 %v2061_v36 }
 0xf7c   :  { %v2052_v8 = vpop.xlane.xlu2 %2051 }
 0xf7d   :  { %v2056_v2 = vmul.f32 %v2044_v37, %v2044_v37  ;;  %v2054_v6 = vmul.f32 0.015625, %v2052_v8  ;;  %v2060_v5 = vsub.f32 %v2034_v54, %v2044_v37 }
 0xf7f   :  { %v2058_v7 = vsub.f32 %v2054_v6, %v2056_v2 }
 0xf81   :  { %v2859_v9 = vpop.eup %2858  ;;  %v2062_v11 = vadd.f32 1e-05, %v2058_v7 }
 0xf82   :  { %v2064_v12 = vmul.f32 %v2859_v9, %v2061_v36  ;;  %vm2070_vm9 = vweird.f32 %v2859_v9 }
 0xf83   :  { %2860 = vrsqrt.f32 %v2062_v11  ;;  %vm2071_vm11 = vmor %vm2069_vm10, %vm2070_vm9  ;;  %vm2079_vm13 = vweird.f32 %v2062_v11 }
 0xf84   :  { %v2065_v13 = vmul.f32 %v2859_v9, %v2064_v12 }
 0xf86   :  { %v2066_v23 = vmul.f32 0.5, %v2065_v13 }
 0xf88   :  { %v2067_v3 = vsub.f32 1.5, %v2066_v23 }
 0xf89   :  { %v2861_v15 = vpop.eup %2860 }
 0xf8a   :  { %v2068_v29 = vmul.f32 %v2859_v9, %v2067_v3  ;;  %v2074_v0 = vmul.f32 %v2861_v15, %v2062_v11  ;;  %vm2080_vm12 = vweird.f32 %v2861_v15 }
 0xf8b   :  { %vm2081_vm14 = vmor %vm2079_vm13, %vm2080_vm12 }
 0xf8c   :  { %v2075_v28 = vmul.f32 %v2861_v15, %v2074_v0  ;;  %v2072_v16 = vsel %vm2071_vm11, %v2859_v9, %v2068_v29 }
 0xf8d   :  { %v2083_v20 = vmul.f32 %v2072_v16, %v2059_v19 }
 0xf8e   :  { %v2076_v61 = vmul.f32 0.5, %v2075_v28 }
 0xf8f   :  { %v2088_v27 = vmul.f32 %v2807_v14, %v2083_v20 }
 0xf90   :  { %v2077_v17 = vsub.f32 1.5, %v2076_v61 }
 0xf91   :  { %v2093_v24 = vadd.f32 %v2808_v32, %v2088_v27 }
 0xf92   :  { %v2078_v21 = vmul.f32 %v2861_v15, %v2077_v17 }
 0xf94   :  { %v2082_v18 = vsel %vm2081_vm14, %v2861_v15, %v2078_v21 }
 0xf95   :  { %v2084_v10 = vmul.f32 %v2082_v18, %v2060_v5 }
 0xf97   :  { %v2089_v30 = vmul.f32 %v2807_v14, %v2084_v10 }
 0xf99   :  { %v2094_v25 = vadd.f32 %v2808_v32, %v2089_v30 }
 0xf9b   :  { %v2095_v31 = vpack.c.bf16 %v2094_v25, %v2093_v24 }
 0xf9d   :  { %2685 = vmatmul.msk.bf16.vlgmr.msra.gmra.mxu1 %vm70_vm0, %v2095_v31 }
0x101a   :  { %v2144_v33 = vpop.f32.mrf.mxu1 }
0x101b   :  { %v2145_v40 = vadd.f32 %v2809_v38, %v2144_v33 }
0x1022   :  { %v2146_v39 = vpop.f32.mrf.mxu1 }
0x1023   :  { %v2147_v41 = vadd.f32 %v2809_v38, %v2146_v39 }
0x1025   :  { %v2789_v42 = vpack.c.bf16 %v2147_v41, %v2145_v40 }
0x1027   :  { %2790 = vst [vmem:[%s3846_s17] sm:$0xff] %v2789_v42  }

</bundles_post_ra>
